<compile_context>
chip_gen: v5e
topology: v5e:2x2
jax: 0.10.0
libtpu: 0.0.40
codegen_flags: <defaults>
</compile_context>

<pallas_src>
import functools

import jax
import jax.numpy as jnp
from jax import lax
from jax.experimental import pallas as pl
from jax.experimental.pallas import tpu as pltpu


def _round_up(x, m):
    return (x + m - 1) // m * m


def _cdiv(a, b):
    return (a + b - 1) // b


def _ffn_kernel_inplace(x_ref, w1_ref, b1_ref, w2_ref, b2_ref, o_ref, *, precision):
    """f32 output: accumulate the hidden-axis partial sums directly into o_ref (no scratch)."""
    k = pl.program_id(1)

    @pl.when(k == 0)
    def _():
        o_ref[...] = jnp.broadcast_to(b2_ref[...], o_ref.shape)

    # Linear 1 (this hidden slice) + bias + ReLU, f32 accumulation on the MXU.
    h = jnp.dot(x_ref[...].astype(w1_ref.dtype), w1_ref[...],
                preferred_element_type=jnp.float32, precision=precision)
    h = jnp.maximum(h + b1_ref[...], 0.0)
    # Dropout(p=0.0) == identity -> omitted.

    # Partial sum of Linear 2 over this hidden slice.
    o_ref[...] += jnp.dot(h.astype(w2_ref.dtype), w2_ref[...],
                          preferred_element_type=jnp.float32, precision=precision)


def _ffn_kernel_acc(x_ref, w1_ref, b1_ref, w2_ref, b2_ref, o_ref, acc_ref, *, precision):
    """Non-f32 output: accumulate in an f32 VMEM scratch, cast once at the last hidden step."""
    k = pl.program_id(1)

    @pl.when(k == 0)
    def _():
        acc_ref[...] = jnp.broadcast_to(b2_ref[...], acc_ref.shape)

    h = jnp.dot(x_ref[...].astype(w1_ref.dtype), w1_ref[...],
                preferred_element_type=jnp.float32, precision=precision)
    h = jnp.maximum(h + b1_ref[...], 0.0)
    acc_ref[...] += jnp.dot(h.astype(w2_ref.dtype), w2_ref[...],
                            preferred_element_type=jnp.float32, precision=precision)

    @pl.when(k == pl.num_programs(1) - 1)
    def _():
        o_ref[...] = acc_ref[...].astype(o_ref.dtype)


def _vmem_budget_bytes():
    cap = 128 * 1024 * 1024
    try:
        info = pltpu.get_tpu_info()
        cap = int(getattr(info, "vmem_capacity_bytes", cap))
    except Exception:
        pass
    # ~25% headroom under physical VMEM for compiler-internal scratch / semaphores.
    return (cap * 3) // 4


def _working_set_bytes(tm, tk, dim_p, x_bytes, w_bytes, out_bytes, need_acc, w_bufs=2):
    ws = 2 * tm * dim_p * x_bytes            # x row tiles (double-buffered)
    ws += w_bufs * dim_p * tk * w_bytes      # W1 hidden slices
    ws += w_bufs * tk * dim_p * w_bytes      # W2 hidden slices
    ws += 2 * (tk + dim_p) * 4               # biases (f32)
    ws += 2 * tm * dim_p * out_bytes         # output row tiles
    if need_acc:
        ws += tm * dim_p * 4                 # f32 accumulator scratch
    return ws


def _shrink_tile(t):
    nt = max(128, _round_up(t // 2, 128))
    if nt >= t:
        nt = max(128, t - 128)
    return nt


def feed_forward(x, w1, b1, w2, b2, *, tm=1024, tk=512, compute_dtype=None):
    """x: (B, N, dim) -> (B, N, dim); matches nn.Sequential(Linear, ReLU, Dropout(0), Linear, Dropout(0)).

    tm / tk are *requested* row / hidden tiles (multiples of 128); actual tiles are chosen to
    fit the generation's VMEM budget. compute_dtype is the MXU input dtype (e.g. bf16);
    accumulation is always f32.
    """
    B, N, dim = x.shape
    hidden = w1.shape[1]
    if compute_dtype is None:
        compute_dtype = x.dtype
    out_dtype = x.dtype

    M = B * N
    dim_p = _round_up(dim, 128)
    hidden_128 = _round_up(hidden, 128)

    x_bytes = jnp.dtype(x.dtype).itemsize
    w_bytes = jnp.dtype(compute_dtype).itemsize
    out_bytes = jnp.dtype(out_dtype).itemsize
    need_acc = jnp.dtype(out_dtype) != jnp.float32

    budget = int(_vmem_budget_bytes())
    ws_budget = (budget * 9) // 10  # slack under vmem_limit_bytes

    # Tile selection: start big (amortize weight streaming), shrink tm first, then tk,
    # until the double-buffered working set fits this generation's VMEM budget.
    tm = min(_round_up(tm, 128), _round_up(M, 128))
    tk = min(_round_up(tk, 128), hidden_128)
    while (_working_set_bytes(tm, tk, dim_p, x_bytes, w_bytes, out_bytes, need_acc)
           > ws_budget) and (tm > 128 or tk > 128):
        if tm >= tk and tm > 128:
            tm = _shrink_tile(tm)
        else:
            tk = _shrink_tile(tk)

    # Prefer an even number of row tiles (v7x: 2 TensorCores share the "parallel" row axis).
    grid_m = _cdiv(M, tm)
    if grid_m > 1 and grid_m % 2 == 1:
        tm_alt = _round_up(_cdiv(M, grid_m + 1), 128)
        if (tm_alt >= 128 and _cdiv(M, tm_alt) % 2 == 0 and
                _working_set_bytes(tm_alt, tk, dim_p, x_bytes, w_bytes, out_bytes,
                                   need_acc) <= ws_budget):
            tm = tm_alt

    M_p = _round_up(M, tm)
    hidden_p = _round_up(hidden, tk)
    grid = (M_p // tm, hidden_p // tk)

    # Triple-buffer the weight slices only when the per-step matmul is short (small row tile)
    # and the hidden loop is long enough to benefit.
    use_buf3 = (tm <= 256 and grid[1] >= 3 and
                _working_set_bytes(tm, tk, dim_p, x_bytes, w_bytes, out_bytes,
                                   need_acc, w_bufs=3) <= ws_budget)
    w_spec_kwargs = {"pipeline_mode": pl.Buffered(3)} if use_buf3 else {}

    # Padding/casting: only when actually needed (zero padding is exact for Linear/ReLU).
    # x keeps its original dtype (cast per-tile in the kernel); W1/W2 get one wrapper cast.
    def _prep2d(a, rows_to, cols_to, dtype):
        if a.dtype != dtype:
            a = a.astype(dtype)
        pr, pc = rows_to - a.shape[0], cols_to - a.shape[1]
        if pr or pc:
            a = jnp.pad(a, ((0, pr), (0, pc)))
        return a

    x2d = _prep2d(x.reshape(M, dim), M_p, dim_p, x.dtype)
    w1_p = _prep2d(w1, dim_p, hidden_p, compute_dtype)
    w2_p = _prep2d(w2, hidden_p, dim_p, compute_dtype)
    b1_p = _prep2d(b1.reshape(1, hidden), 1, hidden_p, jnp.float32)
    b2_p = _prep2d(b2.reshape(1, dim), 1, dim_p, jnp.float32)

    # Strict-f32 path: keep the MXU at full f32 precision (review correctness concern).
    precision = (lax.Precision.HIGHEST
                 if jnp.dtype(compute_dtype) == jnp.float32 else None)

    if need_acc:
        kernel = functools.partial(_ffn_kernel_acc, precision=precision)
        scratch_shapes = [pltpu.VMEM((tm, dim_p), jnp.float32)]
    else:
        kernel = functools.partial(_ffn_kernel_inplace, precision=precision)
        scratch_shapes = []

    out = pl.pallas_call(
        kernel,
        out_shape=jax.ShapeDtypeStruct((M_p, dim_p), out_dtype),
        grid_spec=pltpu.PrefetchScalarGridSpec(
            num_scalar_prefetch=0,
            grid=grid,
            in_specs=[
                pl.BlockSpec((tm, dim_p), lambda i, k: (i, 0)),                    # x row tile
                pl.BlockSpec((dim_p, tk), lambda i, k: (0, k), **w_spec_kwargs),   # W1 slice
                pl.BlockSpec((1, tk), lambda i, k: (0, k)),                        # b1 slice
                pl.BlockSpec((tk, dim_p), lambda i, k: (k, 0), **w_spec_kwargs),   # W2 slice
                pl.BlockSpec((1, dim_p), lambda i, k: (0, 0)),                     # b2
            ],
            out_specs=pl.BlockSpec((tm, dim_p), lambda i, k: (i, 0)),
            scratch_shapes=scratch_shapes,
        ),
        compiler_params=pltpu.CompilerParams(
            dimension_semantics=("parallel", "arbitrary"),
            vmem_limit_bytes=budget,
        ),
    )(x2d, w1_p, b1_p, w2_p, b2_p)

    if M_p != M or dim_p != dim:
        out = out[:M, :dim]
    return out.reshape(B, N, dim)


if __name__ == "__main__":
    # Module config: FeedForward(dim=32, hidden_dim=64), input (batch=2, seq=8, dim=32)
    dim, hidden_dim = 32, 64
    B, N = 2, 8

    key = jax.random.PRNGKey(0)
    kx, kw1, kb1, kw2, kb2 = jax.random.split(key, 5)

    # Deterministic synthetic parameters (nn.Linear(dim, hidden), nn.Linear(hidden, dim)),
    # stored as (in_features, out_features) so no transpose is needed in the kernel.
    bound1 = 1.0 / jnp.sqrt(dim)
    bound2 = 1.0 / jnp.sqrt(hidden_dim)
    w1 = jax.random.uniform(kw1, (dim, hidden_dim), jnp.float32, -bound1, bound1)
    b1 = jax.random.uniform(kb1, (hidden_dim,), jnp.float32, -bound1, bound1)
    w2 = jax.random.uniform(kw2, (hidden_dim, dim), jnp.float32, -bound2, bound2)
    b2 = jax.random.uniform(kb2, (dim,), jnp.float32, -bound2, bound2)

    x = jax.random.normal(kx, (B, N, dim), jnp.float32)

    # Pure-JAX reference (full-precision matmuls).
    h_ref = jnp.maximum(jnp.dot(x, w1, precision=lax.Precision.HIGHEST) + b1, 0.0)
    ref = jnp.dot(h_ref, w2, precision=lax.Precision.HIGHEST) + b2

    # Strict f32 compute path.
    out_f32 = jax.block_until_ready(feed_forward(x, w1, b1, w2, b2))
    assert out_f32.shape == (B, N, dim)
    assert jnp.allclose(out_f32, ref, atol=1e-5, rtol=1e-5)

    # bf16 MXU path with f32 accumulation (looser tolerance).
    out_bf16 = jax.block_until_ready(
        feed_forward(x, w1, b1, w2, b2, compute_dtype=jnp.bfloat16))
    assert jnp.allclose(out_bf16, ref, atol=5e-2, rtol=5e-2)

    print("KERNEL_OK")
</pallas_src>

<mosaic_0001>
module attributes {stable_mosaic.version = 11 : i64} {
  func.func @_ffn_kernel_inplace(%arg0: i32, %arg1: i32, %arg2: memref<128x128xf32, #tpu.memory_space<vmem>>, %arg3: memref<128x128xf32, #tpu.memory_space<vmem>>, %arg4: memref<1x128xf32, #tpu.memory_space<vmem>>, %arg5: memref<128x128xf32, #tpu.memory_space<vmem>>, %arg6: memref<1x128xf32, #tpu.memory_space<vmem>>, %arg7: memref<128x128xf32, #tpu.memory_space<vmem>>) attributes {dimension_semantics = [#tpu.dimension_semantics<parallel>, #tpu.dimension_semantics<arbitrary>], iteration_bounds = array<i64: 1, 1>, scalar_prefetch = 0 : i64, scratch_operands = 0 : i64, tpu.core_type = #tpu.core_type<tc>, window_params = [{transform_indices = @transform_0, window_bounds = array<i64: 128, 128>}, {transform_indices = @transform_1, window_bounds = array<i64: 128, 128>}, {transform_indices = @transform_2, window_bounds = array<i64: 1, 128>}, {transform_indices = @transform_3, window_bounds = array<i64: 128, 128>}, {pipeline_mode = #tpu.pipeline_mode<synchronous>, transform_indices = @transform_4, window_bounds = array<i64: 1, 128>}, {transform_indices = @transform_5, window_bounds = array<i64: 128, 128>}]} {
    %c0_i32 = arith.constant 0 : i32
    %0 = arith.cmpi eq, %arg1, %c0_i32 : i32
    %1 = arith.extui %0 : i1 to i32
    %c0_i32_0 = arith.constant 0 : i32
    %2 = arith.cmpi ne, %1, %c0_i32_0 : i32
    scf.if %2 {
      %c0_14 = arith.constant 0 : index
      %c0_15 = arith.constant 0 : index
      %16 = vector.load %arg6[%c0_14, %c0_15] : memref<1x128xf32, #tpu.memory_space<vmem>>, vector<1x128xf32>
      %17 = vector.shape_cast %16 : vector<1x128xf32> to vector<1x128xf32>
      %18 = vector.broadcast %17 : vector<1x128xf32> to vector<128x128xf32>
      %c0_16 = arith.constant 0 : index
      %c0_17 = arith.constant 0 : index
      %19 = vector.load %arg7[%c0_16, %c0_17] : memref<128x128xf32, #tpu.memory_space<vmem>>, vector<128x128xf32>
      tpu.vector_store %arg7[%c0_16, %c0_17], %18 {strides = array<i32>} : memref<128x128xf32, #tpu.memory_space<vmem>>, vector<128x128xf32>,
    } else {
    }
    %c0 = arith.constant 0 : index
    %c0_1 = arith.constant 0 : index
    %3 = vector.load %arg2[%c0, %c0_1] : memref<128x128xf32, #tpu.memory_space<vmem>>, vector<128x128xf32>
    %c0_2 = arith.constant 0 : index
    %c0_3 = arith.constant 0 : index
    %4 = vector.load %arg3[%c0_2, %c0_3] : memref<128x128xf32, #tpu.memory_space<vmem>>, vector<128x128xf32>
    %cst = arith.constant dense<0.000000e+00> : vector<128x128xf32>
    %5 = tpu.matmul %3, %4, %cst {dimension_numbers = #tpu.dot_dimension_numbers<[1], [0], [0], [1], [0, 0, 1, 1], [], []>, precision = #tpu.contract_precision<fp32>} : vector<128x128xf32>, vector<128x128xf32>, vector<128x128xf32> -> vector<128x128xf32>
    %c0_4 = arith.constant 0 : index
    %c0_5 = arith.constant 0 : index
    %6 = vector.load %arg4[%c0_4, %c0_5] : memref<1x128xf32, #tpu.memory_space<vmem>>, vector<1x128xf32>
    %7 = vector.broadcast %6 : vector<1x128xf32> to vector<128x128xf32>
    %8 = arith.addf %5, %7 : vector<128x128xf32>
    %cst_6 = arith.constant 0.000000e+00 : f32
    %9 = vector.broadcast %cst_6 : f32 to vector<128x128xf32>
    %10 = arith.maximumf %8, %9 : vector<128x128xf32>
    %c0_7 = arith.constant 0 : index
    %c0_8 = arith.constant 0 : index
    %11 = vector.load %arg7[%c0_7, %c0_8] : memref<128x128xf32, #tpu.memory_space<vmem>>, vector<128x128xf32>
    %c0_9 = arith.constant 0 : index
    %c0_10 = arith.constant 0 : index
    %12 = vector.load %arg5[%c0_9, %c0_10] : memref<128x128xf32, #tpu.memory_space<vmem>>, vector<128x128xf32>
    %cst_11 = arith.constant dense<0.000000e+00> : vector<128x128xf32>
    %13 = tpu.matmul %10, %12, %cst_11 {dimension_numbers = #tpu.dot_dimension_numbers<[1], [0], [0], [1], [0, 0, 1, 1], [], []>, precision = #tpu.contract_precision<fp32>} : vector<128x128xf32>, vector<128x128xf32>, vector<128x128xf32> -> vector<128x128xf32>
    %14 = arith.addf %11, %13 : vector<128x128xf32>
    %c0_12 = arith.constant 0 : index
    %c0_13 = arith.constant 0 : index
    %15 = vector.load %arg7[%c0_12, %c0_13] : memref<128x128xf32, #tpu.memory_space<vmem>>, vector<128x128xf32>
    tpu.vector_store %arg7[%c0_12, %c0_13], %14 {strides = array<i32>} : memref<128x128xf32, #tpu.memory_space<vmem>>, vector<128x128xf32>,
    return
  }
  func.func @transform_0(%arg0: i32, %arg1: i32) -> (i32, i32) {
    %c0_i32 = arith.constant 0 : i32
    %c0_i32_0 = arith.constant 0 : i32
    return %arg0, %c0_i32 : i32, i32
  }
  func.func @transform_1(%arg0: i32, %arg1: i32) -> (i32, i32) {
    %c0_i32 = arith.constant 0 : i32
    %c0_i32_0 = arith.constant 0 : i32
    return %c0_i32, %arg1 : i32, i32
  }
  func.func @transform_2(%arg0: i32, %arg1: i32) -> (i32, i32) {
    %c0_i32 = arith.constant 0 : i32
    %c0_i32_0 = arith.constant 0 : i32
    return %c0_i32, %arg1 : i32, i32
  }
  func.func @transform_3(%arg0: i32, %arg1: i32) -> (i32, i32) {
    %c0_i32 = arith.constant 0 : i32
    %c0_i32_0 = arith.constant 0 : i32
    return %arg1, %c0_i32 : i32, i32
  }
  func.func @transform_4(%arg0: i32, %arg1: i32) -> (i32, i32) {
    %c0_i32 = arith.constant 0 : i32
    %c0_i32_0 = arith.constant 0 : i32
    %c0_i32_1 = arith.constant 0 : i32
    return %c0_i32, %c0_i32_0 : i32, i32
  }
  func.func @transform_5(%arg0: i32, %arg1: i32) -> (i32, i32) {
    %c0_i32 = arith.constant 0 : i32
    %c0_i32_0 = arith.constant 0 : i32
    return %arg0, %c0_i32 : i32, i32
  }
}

</mosaic_0001>

<bundles_post_ra>
// kernel: tpu_custom_call.1
= control target key start
LH: loop header
LB: loop body
LE: loop exit
PB: predicated region body
PF: predicated region fallthrough
CT: control target
= control target key end

     0   :  { %10 = vsyncpa [#allocation3], 0  ;;  %s2878_s0 = inlined_call_operand.hbm [shape: f32[128,128], index: 0, kind: input, shape index: {}]   ;;  %s2879_s1 = inlined_call_operand.hbm [shape: f32[128,128], index: 1, kind: input, shape index: {}]   ;;  %s2880_s2 = inlined_call_operand.vmem [shape: f32[1,128], index: 2, kind: input, shape index: {}]   ;;  %s2881_s3 = inlined_call_operand.hbm [shape: f32[128,128], index: 3, kind: input, shape index: {}]   ;;  %s2882_s4 = inlined_call_operand.vmem [shape: f32[1,128], index: 4, kind: input, shape index: {}]   ;;  %s2883_s5 = inlined_call_operand.hbm [shape: f32[128,128], index: 5, kind: output, shape index: {}]  }
   0x1   :  { %11 = vsyncpa [#allocation6], 0 }
   0x2   :  { %12 = vsyncpa [#allocation4], 0  ;;  %s30_s20 = sshll.u32 %s2879_s1, 4  ;;  %s1950_s21 = smov [#allocation5]   ;;  %s31_s20 = int_to_ptr.hbm [resolvable:$true] %s30_s20 }
   0x3   :  { %s32_s22 = sshll.u32 %s1950_s21, 4  ;;  %s17_s25 = sshll.u32 %s2878_s0, 4  ;;  %s33_s22 = int_to_ptr.vmem [resolvable:$true] %s32_s22  ;;  %s18_s25 = int_to_ptr.hbm [resolvable:$true] %s17_s25 }
   0x4   :  { %s1951_s26 = smov 128   ;;  %s1952_s27 = smov 8  }
   0x5   :  { %38 = dma.hbm_to_vmem [thread:$0]  %s31_s20, 2048, %s33_s22, [#allocation6], %s1951_s26, %s1951_s26, %s1952_s27  }
   0x6   :  { %s1953_s28 = smov [#allocation2]   ;;  %s45_s1 = sshll.u32 %s2881_s3, 4  ;;  %s46_s1 = int_to_ptr.hbm [resolvable:$true] %s45_s1 }
   0x7   :  { %s19_s29 = sshll.u32 %s1953_s28, 4  ;;  %s1954_s0 = smov [#allocation7]   ;;  %s20_s29 = int_to_ptr.vmem [resolvable:$true] %s19_s29 }
   0x8   :  { %25 = dma.hbm_to_vmem [thread:$0]  %s18_s25, 2048, %s20_s29, [#allocation3], %s1951_s26, %s1951_s26, %s1952_s27  }
   0x9   :  { %s47_s7 = sshll.u32 %s1954_s0, 4  ;;  %s48_s7 = int_to_ptr.vmem [resolvable:$true] %s47_s7 }
   0xa   :  { %53 = dma.hbm_to_vmem [thread:$0]  %s46_s1, 2048, %s48_s7, [#allocation6], %s1951_s26, %s1951_s26, %s1952_s27  }
   0xb   :  { %1944 = dma.done.wait [#allocation3], 2048  }
   0xc   :  { %1945 = vsyncadd [#allocation3], 4294965248 }
   0xd   :  { %1946 = dma.done.wait [#allocation6], 4096  }
   0xe   :  { %1947 = vsyncadd [#allocation6], 4294963200  ;;  %v123_v0 = vld [vmem:[#allocation5 + $0x78] sm:$0xff]  ;;  %v122_v1 = vld [vmem:[#allocation5 + $0x70] sm:$0xff]  ;;  %s1826_s13 = sshll.u32 %s2883_s5, 4  ;;  %s1827_s13 = int_to_ptr.hbm [resolvable:$true] %s1826_s13 }
   0xf   :  { %v121_v2 = vld [vmem:[#allocation5 + $0x68] sm:$0xff]  ;;  %v2004_v3 = vand.u32 4294901760, %v123_v0  ;;  %v2006_v4 = vand.u32 4294901760, %v122_v1  ;;  %v120_v6 = vld [vmem:[#allocation5 + $0x60] sm:$0xff]  ;;  %v119_v7 = vld [vmem:[#allocation5 + $0x58] sm:$0xff] }
  0x10   :  { %v2008_v5 = vand.u32 4294901760, %v121_v2  ;;  %v118_v8 = vld [vmem:[#allocation5 + $0x50] sm:$0xff]  ;;  %v2010_v9 = vand.u32 4294901760, %v120_v6  ;;  %v2012_v10 = vand.u32 4294901760, %v119_v7  ;;  %v117_v12 = vld [vmem:[#allocation5 + $0x48] sm:$0xff]  ;;  %v116_v13 = vld [vmem:[#allocation5 + $0x40] sm:$0xff] }
  0x11   :  { %v2014_v11 = vand.u32 4294901760, %v118_v8  ;;  %129 = vmatpush.msra.mxu0 %v2004_v3  ;;  %v2018_v14 = vsub.f32 %v123_v0, %v2004_v3  ;;  %v2021_v15 = vsub.f32 %v122_v1, %v2006_v4  ;;  %580 = vmatpush.msra.mxu3 %v2004_v3  ;;  %v2027_v17 = vand.u32 4294901760, %v117_v12  ;;  %v115_v18 = vld [vmem:[#allocation5 + $0x38] sm:$0xff]  ;;  %v114_v29 = vld [vmem:[#allocation5 + $0x30] sm:$0xff]  ;;  %v113_v36 = vld [vmem:[#allocation5 + $0x28] sm:$0xff] }
  0x12   :  { %v2025_v16 = vsub.f32 %v121_v2, %v2008_v5  ;;  %v2030_v19 = vsub.f32 %v120_v6, %v2010_v9  ;;  %v2033_v20 = vsub.f32 %v119_v7, %v2012_v10  ;;  %v2035_v21 = vand.u32 4294901760, %v116_v13  ;;  %v112_v43 = vld [vmem:[#allocation5 + $0x20] sm:$0xff]  ;;  %v111_v49 = vld [vmem:[#allocation5 + $0x18] sm:$0xff]  ;;  %v110_v55 = vld [vmem:[#allocation5 + $0x10] sm:$0xff] }
  0x13   :  { %v2038_v22 = vsub.f32 %v118_v8, %v2014_v11  ;;  %131 = vmatpush.msra.mxu0 %v2006_v4  ;;  %452 = vmatpush.msra.mxu2 %v2018_v14  ;;  %v291_v23 = vand.u32 4294901760, %v2018_v14  ;;  %v297_v24 = vand.u32 4294901760, %v2021_v15  ;;  %v2047_v27 = vand.u32 4294901760, %v115_v18  ;;  %v92_v56 = vld [vmem:[#allocation2] sm:$0xff]  ;;  %v109_v62 = vld [vmem:[#allocation5 + $0x8] sm:$0xff] }
  0x14   :  { %v303_v25 = vand.u32 4294901760, %v2025_v16  ;;  %582 = vmatpush.msra.mxu3 %v2006_v4  ;;  %v309_v26 = vand.u32 4294901760, %v2030_v19  ;;  %v2050_v28 = vsub.f32 %v117_v12, %v2027_v17  ;;  %v315_v33 = vand.u32 4294901760, %v2033_v20  ;;  %v108_v8 = vld [vmem:[#allocation5] sm:$0xff] }
  0x15   :  { %133 = vmatpush.msra.mxu0 %v2008_v5  ;;  %455 = vmatpush.msra.mxu2 %v2021_v15  ;;  %v292_v30 = vsub.f32 %v2018_v14, %v291_v23  ;;  %v298_v31 = vsub.f32 %v2021_v15, %v297_v24  ;;  %v321_v34 = vand.u32 4294901760, %v2038_v22  ;;  %v2067_v35 = vsub.f32 %v116_v13, %v2035_v21  ;;  %v96_v14 = vld [vmem:[#allocation2 + $0x20] sm:$0xff] }
  0x16   :  { %v304_v32 = vsub.f32 %v2025_v16, %v303_v25  ;;  %584 = vmatpush.msra.mxu3 %v2008_v5  ;;  %v310_v39 = vsub.f32 %v2030_v19, %v309_v26  ;;  %v2074_v40 = vand.u32 4294901760, %v114_v29  ;;  %v327_v41 = vand.u32 4294901760, %v2050_v28 }
  0x17   :  { %135 = vmatpush.msra.mxu0 %v2010_v9  ;;  %v293_v37 = vand.u32 4294901760, %v292_v30  ;;  %458 = vmatpush.msra.mxu2 %v2025_v16  ;;  %v299_v38 = vand.u32 4294901760, %v298_v31  ;;  %v2079_v42 = vsub.f32 %v115_v18, %v2047_v27  ;;  %v316_v45 = vsub.f32 %v2033_v20, %v315_v33  ;;  %v93_v30 = vld [vmem:[#allocation2 + $0x8] sm:$0xff] }
  0x18   :  { %586 = vmatpush.msra.mxu3 %v2010_v9  ;;  %v305_v44 = vand.u32 4294901760, %v304_v32  ;;  %v2085_v46 = vand.u32 4294901760, %v113_v36  ;;  %v322_v47 = vsub.f32 %v2038_v22, %v321_v34  ;;  %v333_v48 = vand.u32 4294901760, %v2067_v35  ;;  %v97_v16 = vld [vmem:[#allocation2 + $0x28] sm:$0xff] }
  0x19   :  { %137 = vmatpush.msra.mxu0 %v2012_v10  ;;  %294 = vmatpush.msra.mxu1 %v293_v37  ;;  %v311_v50 = vand.u32 4294901760, %v310_v39  ;;  %v2094_v51 = vand.u32 4294901760, %v112_v43  ;;  %v2097_v52 = vsub.f32 %v114_v29, %v2074_v40  ;;  %v328_v53 = vsub.f32 %v2050_v28, %v327_v41 }
  0x1a   :  { %461 = vmatpush.msra.mxu2 %v2030_v19  ;;  %588 = vmatpush.msra.mxu3 %v2012_v10  ;;  %v339_v54 = vand.u32 4294901760, %v2079_v42  ;;  %v317_v57 = vand.u32 4294901760, %v316_v45  ;;  %v2106_v58 = vand.u32 4294901760, %v111_v49  ;;  %v2109_v59 = vsub.f32 %v113_v36, %v2085_v46 }
  0x1b   :  { %139 = vmatpush.msra.mxu0 %v2014_v11  ;;  %300 = vmatpush.msra.mxu1 %v299_v38  ;;  %v323_v60 = vand.u32 4294901760, %v322_v47  ;;  %v334_v61 = vsub.f32 %v2067_v35, %v333_v48  ;;  %v2117_v63 = vand.u32 4294901760, %v110_v55  ;;  %v345_v0 = vand.u32 4294901760, %v2097_v52 }
  0x1c   :  { %464 = vmatpush.msra.mxu2 %v2033_v20  ;;  %590 = vmatpush.msra.mxu3 %v2014_v11  ;;  %v2121_v1 = vsub.f32 %v112_v43, %v2094_v51  ;;  %v2123_v2 = vand.u32 4294901760, %v92_v56  ;;  %v329_v6 = vand.u32 4294901760, %v328_v53  ;;  %v340_v7 = vsub.f32 %v2079_v42, %v339_v54 }
  0x1d   :  { %141 = vmatpush.msra.mxu0 %v2027_v17  ;;  %306 = vmatpush.msra.mxu1 %v305_v44  ;;  %v2131_v12 = vand.u32 4294901760, %v109_v62  ;;  %v351_v13 = vand.u32 4294901760, %v2109_v59  ;;  %v2135_v18 = vsub.f32 %v111_v49, %v2106_v58  ;;  %v335_v31 = vand.u32 4294901760, %v334_v61 }
  0x1e   :  { %467 = vmatpush.msra.mxu2 %v2038_v22  ;;  %592 = vmatpush.msra.mxu3 %v2027_v17  ;;  %v2138_v29 = vsub.f32 %v92_v56, %v2123_v2  ;;  %v346_v32 = vsub.f32 %v2097_v52, %v345_v0  ;;  %v2146_v36 = vand.u32 4294901760, %v108_v8  ;;  %v357_v37 = vand.u32 4294901760, %v2121_v1 }
  0x1f   :  { %143 = vmatpush.msra.mxu0 %v2035_v21  ;;  %312 = vmatpush.msra.mxu1 %v311_v50  ;;  %v2150_v38 = vsub.f32 %v110_v55, %v2117_v63  ;;  %v2155_v43 = vand.u32 4294901760, %v93_v30  ;;  %v341_v44 = vand.u32 4294901760, %v340_v7  ;;  %v352_v45 = vsub.f32 %v2109_v59, %v351_v13  ;;  %v94_v7 = vld [vmem:[#allocation2 + $0x10] sm:$0xff] }
  0x20   :  { %470 = vmatpush.msra.mxu2 %v2050_v28  ;;  %594 = vmatpush.msra.mxu3 %v2035_v21  ;;  %v162_v39 = vand.u32 4294901760, %v2138_v29  ;;  %v2884_v47 = vand.u32 4294901760, %v2135_v18  ;;  %v2163_v49 = vsub.f32 %v109_v62, %v2131_v12  ;;  %v347_v50 = vand.u32 4294901760, %v346_v32 }
  0x21   :  { %145 = vmatpush.msra.mxu0 %v2047_v27  ;;  %318 = vmatpush.msra.mxu1 %v317_v57  ;;  %v358_v53 = vsub.f32 %v2121_v1, %v357_v37  ;;  %v2886_v55 = vand.u32 4294901760, %v2150_v38  ;;  %v2173_v56 = vsub.f32 %v108_v8, %v2146_v36  ;;  %v353_v61 = vand.u32 4294901760, %v352_v45 }
  0x22   :  { %473 = vmatpush.msra.mxu2 %v2067_v35  ;;  %596 = vmatpush.msra.mxu3 %v2047_v27  ;;  %v163_v57 = vsub.f32 %v2138_v29, %v162_v39  ;;  %v364_v62 = vsub.f32 %v2135_v18, %v2884_v47  ;;  %v2193_v45 = vand.u32 4294901760, %v94_v7  ;;  %v2236_v20 = vand.u32 4294901760, %v97_v16 }
  0x23   :  { %147 = vmatpush.msra.mxu0 %v2074_v40  ;;  %324 = vmatpush.msra.mxu1 %v323_v60  ;;  %v169_v60 = vsub.f32 %v93_v30, %v2155_v43  ;;  %v359_v8 = vand.u32 4294901760, %v358_v53  ;;  %v370_v30 = vsub.f32 %v2150_v38, %v2886_v55  ;;  %v95_v55 = vld [vmem:[#allocation2 + $0x18] sm:$0xff]  ;;  %v2903_v28 = vand.u32 4294901760, %v2135_v18 }
  0x24   :  { %476 = vmatpush.msra.mxu2 %v2079_v42  ;;  %598 = vmatpush.msra.mxu3 %v2074_v40  ;;  %v164_v32 = vand.u32 4294901760, %v163_v57  ;;  %v365_v47 = vand.u32 4294901760, %v364_v62  ;;  %v177_v62 = vsub.f32 %v94_v7, %v2193_v45 }
  0x25   :  { %149 = vmatpush.msra.mxu0 %v2085_v46  ;;  %330 = vmatpush.msra.mxu1 %v329_v6  ;;  %v2885_v6 = vand.u32 4294901760, %v2163_v49  ;;  %v371_v53 = vand.u32 4294901760, %v370_v30 }
  0x26   :  { %479 = vmatpush.msra.mxu2 %v2097_v52  ;;  %600 = vmatpush.msra.mxu3 %v2085_v46 }
  0x27   :  { %151 = vmatpush.msra.mxu0 %v2094_v51  ;;  %336 = vmatpush.msra.mxu1 %v335_v31  ;;  %v2887_v31 = vand.u32 4294901760, %v2173_v56 }
  0x28   :  { %482 = vmatpush.msra.mxu2 %v2109_v59  ;;  %602 = vmatpush.msra.mxu3 %v2094_v51 }
  0x29   :  { %153 = vmatpush.msra.mxu0 %v2106_v58  ;;  %342 = vmatpush.msra.mxu1 %v341_v44  ;;  %v170_v44 = vand.u32 4294901760, %v169_v60  ;;  %v382_v57 = vsub.f32 %v2173_v56, %v2887_v31  ;;  %v2212_v31 = vand.u32 4294901760, %v95_v55 }
  0x2a   :  { %485 = vmatpush.msra.mxu2 %v2121_v1  ;;  %604 = vmatpush.msra.mxu3 %v2106_v58 }
  0x2b   :  { %155 = vmatpush.msra.mxu0 %v2117_v63  ;;  %348 = vmatpush.msra.mxu1 %v347_v50  ;;  %v376_v50 = vsub.f32 %v2163_v49, %v2885_v6 }
  0x2c   :  { %488 = vmatpush.msra.mxu2 %v2135_v18  ;;  %606 = vmatpush.msra.mxu3 %v2117_v63 }
  0x2d   :  { %157 = vmatpush.msra.mxu0 %v2131_v12  ;;  %354 = vmatpush.msra.mxu1 %v353_v61  ;;  %v171_v61 = vsub.f32 %v169_v60, %v170_v44  ;;  %v377_v6 = vand.u32 4294901760, %v376_v50 }
  0x2e   :  { %491 = vmatpush.msra.mxu2 %v2150_v38  ;;  %608 = vmatpush.msra.mxu3 %v2131_v12 }
  0x2f   :  { %159 = vmatpush.msra.mxu0 %v2146_v36  ;;  %360 = vmatpush.msra.mxu1 %v359_v8  ;;  %v383_v8 = vand.u32 4294901760, %v382_v57  ;;  %v172_v30 = vand.u32 4294901760, %v171_v61  ;;  %v104_v57 = vld [vmem:[#allocation2 + $0x60] sm:$0xff] }
  0x30   :  { %165 = vmatmul.f32.vlgmr.msra.gmra.mxu0 %v164_v32  ;;  %494 = vmatpush.msra.mxu2 %v2163_v49  ;;  %v178_v32 = vand.u32 4294901760, %v177_v62 }
  0x31   :  { %366 = vmatpush.msra.mxu1 %v365_v47  ;;  %610 = vmatpush.msra.mxu3 %v2146_v36  ;;  %v185_v47 = vsub.f32 %v95_v55, %v2212_v31 }
  0x32   :  { %497 = vmatpush.msra.mxu2 %v2173_v56  ;;  %614 = vmatmul.f32.vlgmr.msra.gmra.mxu3 %v162_v39  ;;  %v179_v39 = vsub.f32 %v177_v62, %v178_v32 }
  0x33   :  { %372 = vmatpush.msra.mxu1 %v371_v53  ;;  %500 = vmatmul.f32.vlgmr.msra.gmra.mxu2 %v2138_v29  ;;  %v186_v15 = vand.u32 4294901760, %v185_v47 }
  0x34   :  { %711 = vmatpush.msrb.mxu0 %v291_v23  ;;  %v180_v23 = vand.u32 4294901760, %v179_v39  ;;  %v105_v39 = vld [vmem:[#allocation2 + $0x68] sm:$0xff] }
  0x35   :  { %378 = vmatpush.msra.mxu1 %v377_v6 }
  0x36   :  { %715 = vmatpush.msrb.mxu0 %v297_v24  ;;  %v2224_v24 = vand.u32 4294901760, %v96_v14 }
  0x37   :  { %384 = vmatpush.msra.mxu1 %v383_v8  ;;  %v2294_v8 = vand.u32 4294901760, %v104_v57 }
  0x38   :  { %173 = vmatmul.f32.gmra.mxu0 %v172_v30  ;;  %386 = vmatmul.f32.vlgmr.msra.gmra.mxu1 %v2123_v2 }
  0x39   :  { %838 = vmatpush.msrb.mxu1 %v2004_v3  ;;  %719 = vmatpush.msrb.mxu0 %v303_v25  ;;  %v187_v3 = vsub.f32 %v185_v47, %v186_v15 }
  0x3a   :  { %620 = vmatmul.f32.gmra.mxu3 %v170_v44 }
  0x3b   :  { %505 = vmatmul.f32.gmra.mxu2 %v169_v60  ;;  %840 = vmatpush.msrb.mxu1 %v2006_v4  ;;  %v193_v4 = vsub.f32 %v96_v14, %v2224_v24  ;;  %v103_v60 = vld [vmem:[#allocation2 + $0x58] sm:$0xff] }
  0x3c   :  { %723 = vmatpush.msrb.mxu0 %v309_v26  ;;  %v2290_v44 = vand.u32 4294901760, %v103_v60 }
  0x3d   :  { %842 = vmatpush.msrb.mxu1 %v2008_v5  ;;  %v188_v5 = vand.u32 4294901760, %v187_v3  ;;  %v194_v19 = vand.u32 4294901760, %v193_v4 }
  0x3e   :  { %727 = vmatpush.msrb.mxu0 %v315_v33  ;;  %v249_v53 = vsub.f32 %v103_v60, %v2290_v44 }
  0x3f   :  { %844 = vmatpush.msrb.mxu1 %v2010_v9  ;;  %v195_v9 = vsub.f32 %v193_v4, %v194_v19 }
  0x40   :  { %181 = vmatmul.f32.gmra.mxu0 %v180_v23  ;;  %390 = vmatmul.f32.gmra.mxu1 %v2155_v43  ;;  %v2298_v23 = vand.u32 4294901760, %v105_v39 }
  0x41   :  { %846 = vmatpush.msrb.mxu1 %v2012_v10  ;;  %731 = vmatpush.msrb.mxu0 %v321_v34  ;;  %v201_v10 = vsub.f32 %v97_v16, %v2236_v20 }
  0x42   :  { %626 = vmatmul.f32.gmra.mxu3 %v178_v32  ;;  %v257_v32 = vsub.f32 %v104_v57, %v2294_v8  ;;  %v265_v3 = vsub.f32 %v105_v39, %v2298_v23 }
  0x43   :  { %510 = vmatmul.f32.gmra.mxu2 %v177_v62  ;;  %848 = vmatpush.msrb.mxu1 %v2014_v11  ;;  %v98_v11 = vld [vmem:[#allocation2 + $0x30] sm:$0xff]  ;;  %v202_v22 = vand.u32 4294901760, %v201_v10  ;;  %v250_v62 = vand.u32 4294901760, %v249_v53 }
  0x44   :  { %735 = vmatpush.msrb.mxu0 %v327_v41  ;;  %v2905_v41 = vand.u32 4294901760, %v2163_v49  ;;  %v258_v14 = vand.u32 4294901760, %v257_v32 }
  0x45   :  { %850 = vmatpush.msrb.mxu1 %v2027_v17  ;;  %v196_v17 = vand.u32 4294901760, %v195_v9  ;;  %v203_v25 = vsub.f32 %v201_v10, %v202_v22  ;;  %v251_v30 = vsub.f32 %v249_v53, %v250_v62 }
  0x46   :  { %739 = vmatpush.msrb.mxu0 %v333_v48  ;;  %v100_v48 = vld [vmem:[#allocation2 + $0x40] sm:$0xff] }
  0x47   :  { %852 = vmatpush.msrb.mxu1 %v2035_v21  ;;  %v2251_v21 = vand.u32 4294901760, %v98_v11  ;;  %v204_v33 = vand.u32 4294901760, %v203_v25 }
  0x48   :  { %189 = vmatmul.f32.gmra.mxu0 %v188_v5  ;;  %394 = vmatmul.f32.gmra.mxu1 %v2193_v45  ;;  %v266_v5 = vand.u32 4294901760, %v265_v3 }
  0x49   :  { %743 = vmatpush.msrb.mxu0 %v339_v54  ;;  %854 = vmatpush.msrb.mxu1 %v2047_v27  ;;  %v209_v26 = vsub.f32 %v98_v11, %v2251_v21  ;;  %v99_v27 = vld [vmem:[#allocation2 + $0x38] sm:$0xff] }
  0x4a   :  { %632 = vmatmul.f32.gmra.mxu3 %v186_v15  ;;  %v2265_v35 = vand.u32 4294901760, %v99_v27  ;;  %v259_v15 = vsub.f32 %v257_v32, %v258_v14  ;;  %v267_v9 = vsub.f32 %v265_v3, %v266_v5  ;;  %v107_v11 = vld [vmem:[#allocation2 + $0x78] sm:$0xff] }
  0x4b   :  { %515 = vmatmul.f32.gmra.mxu2 %v185_v47  ;;  %747 = vmatpush.msrb.mxu0 %v345_v0  ;;  %v210_v34 = vand.u32 4294901760, %v209_v26  ;;  %v101_v0 = vld [vmem:[#allocation2 + $0x48] sm:$0xff]  ;;  %v252_v47 = vand.u32 4294901760, %v251_v30  ;;  %v2306_v25 = vand.u32 4294901760, %v107_v11  ;;  %v977_v30 = vld [vmem:[#allocation7 + $0x58] sm:$0xff] }
  0x4c   :  { %856 = vmatpush.msrb.mxu1 %v2074_v40  ;;  %v2904_v40 = vand.u32 4294901760, %v2150_v38  ;;  %v260_v16 = vand.u32 4294901760, %v259_v15 }
  0x4d   :  { %751 = vmatpush.msrb.mxu0 %v351_v13  ;;  %v211_v42 = vsub.f32 %v209_v26, %v210_v34  ;;  %v2282_v13 = vand.u32 4294901760, %v101_v0 }
  0x4e   :  { %858 = vmatpush.msrb.mxu1 %v2085_v46  ;;  %v217_v46 = vsub.f32 %v99_v27, %v2265_v35  ;;  %v281_v27 = vsub.f32 %v107_v11, %v2306_v25 }
  0x4f   :  { %755 = vmatpush.msrb.mxu0 %v357_v37  ;;  %v212_v52 = vand.u32 4294901760, %v211_v42  ;;  %v233_v29 = vsub.f32 %v101_v0, %v2282_v13 }
  0x50   :  { %197 = vmatmul.f32.gmra.mxu0 %v196_v17  ;;  %398 = vmatmul.f32.gmra.mxu1 %v2212_v31  ;;  %v218_v54 = vand.u32 4294901760, %v217_v46  ;;  %v268_v17 = vand.u32 4294901760, %v267_v9 }
  0x51   :  { %860 = vmatpush.msrb.mxu1 %v2094_v51  ;;  %759 = vmatpush.msrb.mxu0 %v2903_v28  ;;  %v2906_v51 = vand.u32 4294901760, %v2173_v56  ;;  %v234_v38 = vand.u32 4294901760, %v233_v29 }
  0x52   :  { %638 = vmatmul.f32.gmra.mxu3 %v194_v19  ;;  %v219_v59 = vsub.f32 %v217_v46, %v218_v54 }
  0x53   :  { %520 = vmatmul.f32.gmra.mxu2 %v193_v4  ;;  %862 = vmatpush.msrb.mxu1 %v2106_v58  ;;  %v2278_v58 = vand.u32 4294901760, %v100_v48  ;;  %v235_v55 = vsub.f32 %v233_v29, %v234_v38  ;;  %v106_v4 = vld [vmem:[#allocation2 + $0x70] sm:$0xff] }
  0x54   :  { %763 = vmatpush.msrb.mxu0 %v2904_v40  ;;  %v220_v1 = vand.u32 4294901760, %v219_v59  ;;  %v2302_v19 = vand.u32 4294901760, %v106_v4  ;;  %v981_v40 = vld [vmem:[#allocation7 + $0x78] sm:$0xff] }
  0x55   :  { %864 = vmatpush.msrb.mxu1 %v2117_v63  ;;  %v225_v63 = vsub.f32 %v100_v48, %v2278_v58  ;;  %v236_v6 = vand.u32 4294901760, %v235_v55 }
  0x56   :  { %767 = vmatpush.msrb.mxu0 %v2905_v41  ;;  %v2311_v41 = vand.u32 4294901760, %v981_v40 }
  0x57   :  { %866 = vmatpush.msrb.mxu1 %v2131_v12  ;;  %v226_v12 = vand.u32 4294901760, %v225_v63 }
  0x58   :  { %205 = vmatmul.f32.gmra.mxu0 %v204_v33  ;;  %402 = vmatmul.f32.gmra.mxu1 %v2224_v24  ;;  %v282_v33 = vand.u32 4294901760, %v281_v27 }
  0x59   :  { %771 = vmatpush.msrb.mxu0 %v2906_v51  ;;  %868 = vmatpush.msrb.mxu1 %v2146_v36  ;;  %v227_v18 = vsub.f32 %v225_v63, %v226_v12  ;;  %v102_v36 = vld [vmem:[#allocation2 + $0x50] sm:$0xff] }
  0x5a   :  { %644 = vmatmul.f32.gmra.mxu3 %v202_v22  ;;  %v2286_v49 = vand.u32 4294901760, %v102_v36  ;;  %983 = vmatpush.msrb.mxu2 %v2311_v41 }
  0x5b   :  { %525 = vmatmul.f32.gmra.mxu2 %v201_v10  ;;  %v228_v37 = vand.u32 4294901760, %v227_v18  ;;  %v273_v10 = vsub.f32 %v106_v4, %v2302_v19  ;;  %1434 = vmatpush.msra.mxu1 %v2311_v41  ;;  %v979_v18 = vld [vmem:[#allocation7 + $0x68] sm:$0xff]  ;;  %v976_v4 = vld [vmem:[#allocation7 + $0x50] sm:$0xff] }
  0x5c   :  { %v241_v56 = vsub.f32 %v102_v36, %v2286_v49 }
  0x5d   :  { %v274_v22 = vand.u32 4294901760, %v273_v10 }
  0x5e   :  { %v242_v7 = vand.u32 4294901760, %v241_v56 }
  0x60   :  { %213 = vmatmul.f32.gmra.mxu0 %v212_v52  ;;  %406 = vmatmul.f32.gmra.mxu1 %v2236_v20  ;;  %v243_v50 = vsub.f32 %v241_v56, %v242_v7  ;;  %v980_v52 = vld [vmem:[#allocation7 + $0x70] sm:$0xff] }
  0x62   :  { %650 = vmatmul.f32.gmra.mxu3 %v210_v34  ;;  %v244_v61 = vand.u32 4294901760, %v243_v50  ;;  %v283_v34 = vsub.f32 %v281_v27, %v282_v33 }
  0x63   :  { %530 = vmatmul.f32.gmra.mxu2 %v209_v26  ;;  %v275_v26 = vsub.f32 %v273_v10, %v274_v22 }
  0x64   :  { %v284_v42 = vand.u32 4294901760, %v283_v34 }
  0x65   :  { %v276_v28 = vand.u32 4294901760, %v275_v26 }
  0x68   :  { %221 = vmatmul.f32.gmra.mxu0 %v220_v1  ;;  %410 = vmatmul.f32.gmra.mxu1 %v2251_v21 }
  0x6a   :  { %656 = vmatmul.f32.gmra.mxu3 %v218_v54  ;;  %v2324_v54 = vand.u32 4294901760, %v980_v52 }
  0x6b   :  { %535 = vmatmul.f32.gmra.mxu2 %v217_v46  ;;  %v2316_v46 = vsub.f32 %v981_v40, %v2311_v41 }
  0x6c   :  { %985 = vmatpush.msrb.mxu2 %v2324_v54  ;;  %1436 = vmatpush.msra.mxu1 %v2324_v54  ;;  %v2331_v0 = vsub.f32 %v980_v52, %v2324_v54 }
  0x6d   :  { %v2899_v48 = vand.u32 4294901760, %v2316_v46  ;;  %1306 = vmatpush.msra.mxu0 %v2316_v46 }
  0x6e   :  { %v2898_v1 = vand.u32 4294901760, %v2331_v0 }
  0x6f   :  { %v1146_v51 = vsub.f32 %v2316_v46, %v2899_v48  ;;  %1309 = vmatpush.msra.mxu0 %v2331_v0  ;;  %v967_v48 = vld [vmem:[#allocation7 + $0x8] sm:$0xff] }
  0x70   :  { %229 = vmatmul.f32.gmra.mxu0 %v228_v37  ;;  %414 = vmatmul.f32.gmra.mxu1 %v2265_v35 }
  0x71   :  { %v1147_v59 = vand.u32 4294901760, %v1146_v51 }
  0x72   :  { %662 = vmatmul.f32.gmra.mxu3 %v226_v12  ;;  %v1152_v12 = vsub.f32 %v2331_v0, %v2898_v1 }
  0x73   :  { %540 = vmatmul.f32.gmra.mxu2 %v225_v63  ;;  %1148 = vmatpush.msrb.mxu3 %v1147_v59 }
  0x74   :  { %v1153_v36 = vand.u32 4294901760, %v1152_v12 }
  0x76   :  { %1154 = vmatpush.msrb.mxu3 %v1153_v36 }
  0x78   :  { %237 = vmatmul.f32.gmra.mxu0 %v236_v6  ;;  %418 = vmatmul.f32.gmra.mxu1 %v2278_v58  ;;  %v978_v6 = vld [vmem:[#allocation7 + $0x60] sm:$0xff] }
  0x7a   :  { %668 = vmatmul.f32.gmra.mxu3 %v234_v38 }
  0x7b   :  { %545 = vmatmul.f32.gmra.mxu2 %v233_v29  ;;  %v2340_v29 = vand.u32 4294901760, %v979_v18 }
  0x7d   :  { %987 = vmatpush.msrb.mxu2 %v2340_v29  ;;  %1438 = vmatpush.msra.mxu1 %v2340_v29  ;;  %v2349_v55 = vsub.f32 %v979_v18, %v2340_v29 }
  0x7f   :  { %1312 = vmatpush.msra.mxu0 %v2349_v55 }
  0x80   :  { %245 = vmatmul.f32.gmra.mxu0 %v244_v61  ;;  %422 = vmatmul.f32.gmra.mxu1 %v2282_v13 }
  0x82   :  { %674 = vmatmul.f32.gmra.mxu3 %v242_v7  ;;  %v2358_v7 = vand.u32 4294901760, %v978_v6 }
  0x83   :  { %550 = vmatmul.f32.gmra.mxu2 %v241_v56  ;;  %v2897_v56 = vand.u32 4294901760, %v2349_v55 }
  0x84   :  { %989 = vmatpush.msrb.mxu2 %v2358_v7  ;;  %1440 = vmatpush.msra.mxu1 %v2358_v7 }
  0x85   :  { %v1158_v60 = vsub.f32 %v2349_v55, %v2897_v56 }
  0x87   :  { %v1159_v50 = vand.u32 4294901760, %v1158_v60  ;;  %v973_v60 = vld [vmem:[#allocation7 + $0x38] sm:$0xff] }
  0x88   :  { %253 = vmatmul.f32.gmra.mxu0 %v252_v47  ;;  %426 = vmatmul.f32.gmra.mxu1 %v2286_v49 }
  0x89   :  { %1160 = vmatpush.msrb.mxu3 %v1159_v50 }
  0x8a   :  { %680 = vmatmul.f32.gmra.mxu3 %v250_v62 }
  0x8b   :  { %555 = vmatmul.f32.gmra.mxu2 %v249_v53 }
  0x90   :  { %261 = vmatmul.f32.gmra.mxu0 %v260_v16  ;;  %430 = vmatmul.f32.gmra.mxu1 %v2290_v44  ;;  %v2394_v16 = vand.u32 4294901760, %v976_v4 }
  0x92   :  { %686 = vmatmul.f32.gmra.mxu3 %v258_v14 }
  0x93   :  { %560 = vmatmul.f32.gmra.mxu2 %v257_v32  ;;  %v2376_v32 = vand.u32 4294901760, %v977_v30 }
  0x95   :  { %991 = vmatpush.msrb.mxu2 %v2376_v32  ;;  %1442 = vmatpush.msra.mxu1 %v2376_v32 }
  0x97   :  { %993 = vmatpush.msrb.mxu2 %v2394_v16  ;;  %1444 = vmatpush.msra.mxu1 %v2394_v16 }
  0x98   :  { %269 = vmatmul.f32.gmra.mxu0 %v268_v17  ;;  %434 = vmatmul.f32.gmra.mxu1 %v2294_v8 }
  0x9a   :  { %692 = vmatmul.f32.gmra.mxu3 %v266_v5 }
  0x9b   :  { %565 = vmatmul.f32.gmra.mxu2 %v265_v3 }
  0xa0   :  { %277 = vmatmul.f32.gmra.mxu0 %v276_v28  ;;  %438 = vmatmul.f32.gmra.mxu1 %v2298_v23 }
  0xa2   :  { %698 = vmatmul.f32.gmra.mxu3 %v274_v22  ;;  %v975_v22 = vld [vmem:[#allocation7 + $0x48] sm:$0xff] }
  0xa3   :  { %570 = vmatmul.f32.gmra.mxu2 %v273_v10  ;;  %v2412_v26 = vand.u32 4294901760, %v975_v22 }
  0xa5   :  { %995 = vmatpush.msrb.mxu2 %v2412_v26  ;;  %1446 = vmatpush.msra.mxu1 %v2412_v26 }
  0xa8   :  { %285 = vmatmul.f32.gmra.mxu0 %v284_v42  ;;  %442 = vmatmul.f32.gmra.mxu1 %v2302_v19  ;;  %v974_v42 = vld [vmem:[#allocation7 + $0x40] sm:$0xff] }
  0xa9   :  { %v2430_v51 = vand.u32 4294901760, %v974_v42 }
  0xaa   :  { %704 = vmatmul.f32.gmra.mxu3 %v282_v33 }
  0xab   :  { %575 = vmatmul.f32.gmra.mxu2 %v281_v27  ;;  %1448 = vmatpush.msra.mxu1 %v2430_v51 }
  0xac   :  { %997 = vmatpush.msrb.mxu2 %v2430_v51 }
  0xad   :  { %v2326_v63 = vpop.f32.mrf.mxu0 }
  0xb0   :  { %446 = vmatmul.f32.gmra.mxu1 %v2306_v25  ;;  %773 = vmatmul.f32.vlgmr.msrb.gmra.mxu0 %v2123_v2 }
  0xb5   :  { %v2342_v37 = vpop.f32.mrf.mxu0  ;;  %v2344_v38 = vpop.f32.mrf.mxu1 }
  0xb6   :  { %v2540_v56 = vpop.f32.mrf.mxu2 }
  0xb8   :  { %777 = vmatmul.f32.gmra.mxu0 %v2155_v43  ;;  %870 = vmatmul.f32.vlgmr.msrb.gmra.mxu1 %v2123_v2  ;;  %v2367_v2 = vsub.f32 %v978_v6, %v2358_v7  ;;  %v2448_v6 = vand.u32 4294901760, %v973_v60 }
  0xba   :  { %v2896_v61 = vand.u32 4294901760, %v2367_v2  ;;  %1315 = vmatpush.msra.mxu0 %v2367_v2  ;;  %999 = vmatpush.msrb.mxu2 %v2448_v6 }
  0xbb   :  { %1450 = vmatpush.msra.mxu1 %v2448_v6 }
  0xbc   :  { %v1164_v62 = vsub.f32 %v2367_v2, %v2896_v61 }
  0xbd   :  { %v2360_v53 = vpop.f32.mrf.mxu0  ;;  %v2362_v57 = vpop.f32.mrf.mxu1 }
  0xbe   :  { %v1165_v39 = vand.u32 4294901760, %v1164_v62 }
  0xc0   :  { %781 = vmatmul.f32.gmra.mxu0 %v2193_v45  ;;  %874 = vmatmul.f32.gmra.mxu1 %v2155_v43  ;;  %v2385_v43 = vsub.f32 %v977_v30, %v2376_v32 }
  0xc1   :  { %1166 = vmatpush.msrb.mxu3 %v1165_v39 }
  0xc2   :  { %v2895_v15 = vand.u32 4294901760, %v2385_v43  ;;  %1318 = vmatpush.msra.mxu0 %v2385_v43 }
  0xc4   :  { %v1170_v3 = vsub.f32 %v2385_v43, %v2895_v15  ;;  %v968_v15 = vld [vmem:[#allocation7 + $0x10] sm:$0xff] }
  0xc5   :  { %v2378_v47 = vpop.f32.mrf.mxu0  ;;  %v2380_v14 = vpop.f32.mrf.mxu1  ;;  %v2538_v61 = vand.u32 4294901760, %v968_v15 }
  0xc6   :  { %v1171_v5 = vand.u32 4294901760, %v1170_v3 }
  0xc8   :  { %785 = vmatmul.f32.gmra.mxu0 %v2212_v31  ;;  %878 = vmatmul.f32.gmra.mxu1 %v2193_v45  ;;  %v2403_v45 = vsub.f32 %v976_v4, %v2394_v16  ;;  %v972_v4 = vld [vmem:[#allocation7 + $0x30] sm:$0xff] }
  0xc9   :  { %1172 = vmatpush.msrb.mxu3 %v1171_v5  ;;  %v2466_v5 = vand.u32 4294901760, %v972_v4 }
  0xca   :  { %v2893_v11 = vand.u32 4294901760, %v2403_v45  ;;  %1321 = vmatpush.msra.mxu0 %v2403_v45 }
  0xcb   :  { %1001 = vmatpush.msrb.mxu2 %v2466_v5  ;;  %1452 = vmatpush.msra.mxu1 %v2466_v5 }
  0xcc   :  { %v1176_v17 = vsub.f32 %v2403_v45, %v2893_v11 }
  0xcd   :  { %v2396_v9 = vpop.f32.mrf.mxu0  ;;  %v2398_v10 = vpop.f32.mrf.mxu1 }
  0xce   :  { %v1177_v27 = vand.u32 4294901760, %v1176_v17 }
  0xd0   :  { %789 = vmatmul.f32.gmra.mxu0 %v2224_v24  ;;  %882 = vmatmul.f32.gmra.mxu1 %v2212_v31  ;;  %v2421_v31 = vsub.f32 %v975_v22, %v2412_v26 }
  0xd1   :  { %1178 = vmatpush.msrb.mxu3 %v1177_v27 }
  0xd2   :  { %v2892_v34 = vand.u32 4294901760, %v2421_v31  ;;  %1324 = vmatpush.msra.mxu0 %v2421_v31 }
  0xd4   :  { %v1182_v40 = vsub.f32 %v2421_v31, %v2892_v34 }
  0xd5   :  { %v2414_v28 = vpop.f32.mrf.mxu0  ;;  %v2416_v33 = vpop.f32.mrf.mxu1 }
  0xd6   :  { %v1183_v52 = vand.u32 4294901760, %v1182_v40 }
  0xd8   :  { %793 = vmatmul.f32.gmra.mxu0 %v2236_v20  ;;  %886 = vmatmul.f32.gmra.mxu1 %v2224_v24  ;;  %v2439_v24 = vsub.f32 %v974_v42, %v2430_v51 }
  0xd9   :  { %1184 = vmatpush.msrb.mxu3 %v1183_v52  ;;  %v971_v52 = vld [vmem:[#allocation7 + $0x28] sm:$0xff] }
  0xda   :  { %v2891_v18 = vand.u32 4294901760, %v2439_v24  ;;  %1327 = vmatpush.msra.mxu0 %v2439_v24 }
  0xdc   :  { %v1188_v36 = vsub.f32 %v2439_v24, %v2891_v18  ;;  %v969_v18 = vld [vmem:[#allocation7 + $0x18] sm:$0xff] }
  0xdd   :  { %v2432_v59 = vpop.f32.mrf.mxu0  ;;  %v2434_v12 = vpop.f32.mrf.mxu1  ;;  %v2520_v34 = vand.u32 4294901760, %v969_v18 }
  0xde   :  { %v1189_v50 = vand.u32 4294901760, %v1188_v36  ;;  %v2484_v36 = vand.u32 4294901760, %v971_v52 }
  0xe0   :  { %797 = vmatmul.f32.gmra.mxu0 %v2251_v21  ;;  %890 = vmatmul.f32.gmra.mxu1 %v2236_v20  ;;  %v2457_v20 = vsub.f32 %v973_v60, %v2448_v6 }
  0xe1   :  { %1190 = vmatpush.msrb.mxu3 %v1189_v50  ;;  %1003 = vmatpush.msrb.mxu2 %v2484_v36 }
  0xe2   :  { %v2889_v39 = vand.u32 4294901760, %v2457_v20  ;;  %1330 = vmatpush.msra.mxu0 %v2457_v20  ;;  %1454 = vmatpush.msra.mxu1 %v2484_v36 }
  0xe4   :  { %v1194_v3 = vsub.f32 %v2457_v20, %v2889_v39 }
  0xe5   :  { %v2450_v62 = vpop.f32.mrf.mxu0  ;;  %v2452_v30 = vpop.f32.mrf.mxu1 }
  0xe6   :  { %v1195_v17 = vand.u32 4294901760, %v1194_v3 }
  0xe8   :  { %801 = vmatmul.f32.gmra.mxu0 %v2265_v35  ;;  %894 = vmatmul.f32.gmra.mxu1 %v2251_v21  ;;  %v2475_v21 = vsub.f32 %v972_v4, %v2466_v5 }
  0xe9   :  { %1196 = vmatpush.msrb.mxu3 %v1195_v17 }
  0xea   :  { %v2888_v40 = vand.u32 4294901760, %v2475_v21  ;;  %1333 = vmatpush.msra.mxu0 %v2475_v21 }
  0xec   :  { %v1200_v42 = vsub.f32 %v2475_v21, %v2888_v40 }
  0xed   :  { %v2468_v22 = vpop.f32.mrf.mxu0  ;;  %v2470_v27 = vpop.f32.mrf.mxu1 }
  0xee   :  { %2907 = vst [vmem:[#allocation12_spill] sm:$0xff] %v2468_v22  ;;  %v1201_v60 = vand.u32 4294901760, %v1200_v42  ;;  %v970_v42 = vld [vmem:[#allocation7 + $0x20] sm:$0xff]  ;;  %v2921_v22 = vand.u32 4294901760, %v2367_v2 }
  0xef   :  { %v2502_v40 = vand.u32 4294901760, %v970_v42  ;;  %v2616_v2 = vld [vmem:[%s2880_s2] ss:$0 sm:$0xff] }
  0xf0   :  { %805 = vmatmul.f32.gmra.mxu0 %v2278_v58  ;;  %898 = vmatmul.f32.gmra.mxu1 %v2265_v35  ;;  %v2493_v35 = vsub.f32 %v971_v52, %v2484_v36 }
  0xf1   :  { %1202 = vmatpush.msrb.mxu3 %v1201_v60  ;;  %1005 = vmatpush.msrb.mxu2 %v2502_v40 }
  0xf2   :  { %v2890_v4 = vand.u32 4294901760, %v2493_v35  ;;  %1336 = vmatpush.msra.mxu0 %v2493_v35  ;;  %1456 = vmatpush.msra.mxu1 %v2502_v40 }
  0xf3   :  { %1007 = vmatpush.msrb.mxu2 %v2520_v34 }
  0xf4   :  { %v1206_v17 = vsub.f32 %v2493_v35, %v2890_v4  ;;  %1458 = vmatpush.msra.mxu1 %v2520_v34 }
  0xf5   :  { %v2486_v50 = vpop.f32.mrf.mxu0  ;;  %v2488_v3 = vpop.f32.mrf.mxu1  ;;  %1009 = vmatpush.msrb.mxu2 %v2538_v61 }
  0xf6   :  { %2908 = vst [vmem:[#allocation13_spill] sm:$0xff] %v2486_v50  ;;  %v1207_v39 = vand.u32 4294901760, %v1206_v17  ;;  %1460 = vmatpush.msra.mxu1 %v2538_v61 }
  0xf7   :  { %2909 = vst [vmem:[#allocation14_spill] sm:$0xff] %v2488_v3  ;;  %v2587_v3 = vpop.f32.mrf.mxu2 }
  0xf8   :  { %809 = vmatmul.f32.gmra.mxu0 %v2282_v13  ;;  %902 = vmatmul.f32.gmra.mxu1 %v2278_v58  ;;  %v2511_v58 = vsub.f32 %v970_v42, %v2502_v40 }
  0xf9   :  { %1208 = vmatpush.msrb.mxu3 %v1207_v39 }
  0xfa   :  { %v2894_v4 = vand.u32 4294901760, %v2511_v58  ;;  %1339 = vmatpush.msra.mxu0 %v2511_v58 }
  0xfc   :  { %v1212_v17 = vsub.f32 %v2511_v58, %v2894_v4 }
  0xfd   :  { %v2504_v60 = vpop.f32.mrf.mxu0  ;;  %v2506_v52 = vpop.f32.mrf.mxu1 }
  0xfe   :  { %2910 = vst [vmem:[#allocation15_spill] sm:$0xff] %v2504_v60  ;;  %v1213_v11 = vand.u32 4294901760, %v1212_v17  ;;  %v2916_v60 = vand.u32 4294901760, %v2316_v46 }
  0xff   :  { %2911 = vst [vmem:[#allocation16_spill] sm:$0xff] %v2506_v52 }
 0x100   :  { %813 = vmatmul.f32.gmra.mxu0 %v2286_v49  ;;  %906 = vmatmul.f32.gmra.mxu1 %v2282_v13  ;;  %v2529_v13 = vsub.f32 %v969_v18, %v2520_v34 }
 0x101   :  { %1214 = vmatpush.msrb.mxu3 %v1213_v11 }
 0x102   :  { %v2900_v4 = vand.u32 4294901760, %v2529_v13  ;;  %1342 = vmatpush.msra.mxu0 %v2529_v13 }
 0x104   :  { %v1218_v17 = vsub.f32 %v2529_v13, %v2900_v4  ;;  %v2551_v4 = vand.u32 4294901760, %v967_v48 }
 0x105   :  { %v2522_v39 = vpop.f32.mrf.mxu0  ;;  %v2524_v42 = vpop.f32.mrf.mxu1 }
 0x106   :  { %2912 = vst [vmem:[#allocation17_spill] sm:$0xff] %v2522_v39  ;;  %v1219_v11 = vand.u32 4294901760, %v1218_v17  ;;  %v2553_v39 = vpop.f32.mrf.mxu3  ;;  %1011 = vmatpush.msrb.mxu2 %v2551_v4  ;;  %1462 = vmatpush.msra.mxu1 %v2551_v4 }
 0x107   :  { %2913 = vst [vmem:[#allocation18_spill] sm:$0xff] %v2524_v42 }
 0x108   :  { %817 = vmatmul.f32.gmra.mxu0 %v2290_v44  ;;  %910 = vmatmul.f32.gmra.mxu1 %v2286_v49  ;;  %v2549_v49 = vsub.f32 %v968_v15, %v2538_v61 }
 0x109   :  { %1220 = vmatpush.msrb.mxu3 %v1219_v11 }
 0x10a   :  { %v2901_v17 = vand.u32 4294901760, %v2549_v49  ;;  %1345 = vmatpush.msra.mxu0 %v2549_v49 }
 0x10c   :  { %v1224_v11 = vsub.f32 %v2549_v49, %v2901_v17 }
 0x10d   :  { %v2542_v18 = vpop.f32.mrf.mxu0  ;;  %v2544_v1 = vpop.f32.mrf.mxu1 }
 0x10e   :  { %2914 = vst [vmem:[#allocation19_spill] sm:$0xff] %v2542_v18  ;;  %v966_v18 = vld [vmem:[#allocation7] sm:$0xff] }
 0x10f   :  { %2915 = vst [vmem:[#allocation20_spill] sm:$0xff] %v2544_v1  ;;  %v2560_v1 = vsub.f32 %v967_v48, %v2551_v4  ;;  %v2563_v15 = vand.u32 4294901760, %v966_v18  ;;  %v1225_v48 = vand.u32 4294901760, %v1224_v11  ;;  %v2919_v11 = vand.u32 4294901760, %v2331_v0 }
 0x110   :  { %821 = vmatmul.f32.gmra.mxu0 %v2294_v8  ;;  %914 = vmatmul.f32.gmra.mxu1 %v2290_v44 }
 0x111   :  { %v2902_v44 = vand.u32 4294901760, %v2560_v1  ;;  %v2571_v42 = vsub.f32 %v966_v18, %v2563_v15  ;;  %1348 = vmatpush.msra.mxu0 %v2560_v1  ;;  %1013 = vmatpush.msrb.mxu2 %v2563_v15 }
 0x112   :  { %1464 = vmatpush.msra.mxu1 %v2563_v15  ;;  %1226 = vmatpush.msrb.mxu3 %v1225_v48 }
 0x113   :  { %1565 = vmatpush.msra.mxu2 %v2916_v60  ;;  %v1230_v50 = vsub.f32 %v2560_v1, %v2902_v44  ;;  %v1235_v18 = vand.u32 4294901760, %v2571_v42  ;;  %1351 = vmatpush.msra.mxu0 %v2571_v42  ;;  %v2920_v44 = vand.u32 4294901760, %v2349_v55  ;;  %v511_v55 = vpop.f32.mrf.mxu2 }
 0x115   :  { %v2578_v52 = vpop.f32.mrf.mxu0  ;;  %v2580_v17 = vpop.f32.mrf.mxu1  ;;  %1569 = vmatpush.msra.mxu2 %v2919_v11  ;;  %v1231_v46 = vand.u32 4294901760, %v1230_v50  ;;  %v1236_v60 = vsub.f32 %v2571_v42, %v1235_v18  ;;  %v2922_v42 = vand.u32 4294901760, %v2385_v43 }
 0x116   :  { %2917 = vst [vmem:[#allocation21_spill] sm:$0xff] %v2578_v52 }
 0x117   :  { %2918 = vst [vmem:[#allocation22_spill] sm:$0xff] %v2580_v17  ;;  %1232 = vmatpush.msrb.mxu3 %v1231_v46  ;;  %v1237_v52 = vand.u32 4294901760, %v1236_v60  ;;  %1573 = vmatpush.msra.mxu2 %v2920_v44  ;;  %v621_v17 = vpop.f32.mrf.mxu3 }
 0x118   :  { %825 = vmatmul.f32.gmra.mxu0 %v2298_v23  ;;  %918 = vmatmul.f32.gmra.mxu1 %v2294_v8  ;;  %v2923_v8 = vand.u32 4294901760, %v2403_v45 }
 0x119   :  { %1238 = vmatpush.msrb.mxu3 %v1237_v52  ;;  %1577 = vmatpush.msra.mxu2 %v2921_v22 }
 0x11b   :  { %1692 = vmatpush.msra.mxu3 %v2311_v41  ;;  %1581 = vmatpush.msra.mxu2 %v2922_v42  ;;  %v2924_v41 = vand.u32 4294901760, %v2421_v31  ;;  %v2928_v31 = vand.u32 4294901760, %v2493_v35 }
 0x11d   :  { %v2599_v0 = vpop.f32.mrf.mxu0  ;;  %v2601_v50 = vpop.f32.mrf.mxu1  ;;  %1694 = vmatpush.msra.mxu3 %v2324_v54  ;;  %1585 = vmatpush.msra.mxu2 %v2923_v8  ;;  %v2925_v54 = vand.u32 4294901760, %v2439_v24 }
 0x11e   :  { %v516_v24 = vpop.f32.mrf.mxu2 }
 0x11f   :  { %1696 = vmatpush.msra.mxu3 %v2340_v29  ;;  %1589 = vmatpush.msra.mxu2 %v2924_v41  ;;  %v627_v43 = vpop.f32.mrf.mxu3  ;;  %v167_v29 = vadd.f32 %v2616_v2, %v2326_v63  ;;  %v2929_v63 = vand.u32 4294901760, %v2511_v58 }
 0x120   :  { %829 = vmatmul.f32.gmra.mxu0 %v2302_v19  ;;  %922 = vmatmul.f32.gmra.mxu1 %v2298_v23  ;;  %v2926_v23 = vand.u32 4294901760, %v2457_v20 }
 0x121   :  { %1698 = vmatpush.msra.mxu3 %v2358_v7  ;;  %1593 = vmatpush.msra.mxu2 %v2925_v54  ;;  %v2927_v7 = vand.u32 4294901760, %v2475_v21 }
 0x123   :  { %1700 = vmatpush.msra.mxu3 %v2376_v32  ;;  %1597 = vmatpush.msra.mxu2 %v2926_v23  ;;  %v388_v32 = vadd.f32 %v2344_v38, %v167_v29  ;;  %v199_v23 = vadd.f32 %v2616_v2, %v2396_v9 }
 0x125   :  { %v2621_v45 = vpop.f32.mrf.mxu0  ;;  %v2623_v22 = vpop.f32.mrf.mxu1  ;;  %1702 = vmatpush.msra.mxu3 %v2394_v16  ;;  %1601 = vmatpush.msra.mxu2 %v2927_v7  ;;  %v502_v21 = vadd.f32 %v2540_v56, %v388_v32 }
 0x127   :  { %1704 = vmatpush.msra.mxu3 %v2412_v26  ;;  %1605 = vmatpush.msra.mxu2 %v2928_v31  ;;  %v175_v26 = vadd.f32 %v2616_v2, %v2342_v37  ;;  %v633_v38 = vpop.f32.mrf.mxu3  ;;  %v616_v35 = vadd.f32 %v2553_v39, %v502_v21  ;;  %v521_v37 = vpop.f32.mrf.mxu2 }
 0x128   :  { %833 = vmatmul.f32.gmra.mxu0 %v2306_v25  ;;  %926 = vmatmul.f32.gmra.mxu1 %v2302_v19  ;;  %v2930_v19 = vand.u32 4294901760, %v2529_v13 }
 0x129   :  { %1706 = vmatpush.msra.mxu3 %v2430_v51  ;;  %1609 = vmatpush.msra.mxu2 %v2929_v63  ;;  %v2931_v51 = vand.u32 4294901760, %v2549_v49  ;;  %v392_v52 = vadd.f32 %v2362_v57, %v175_v26 }
 0x12b   :  { %1708 = vmatpush.msra.mxu3 %v2448_v6  ;;  %1613 = vmatpush.msra.mxu2 %v2930_v19  ;;  %v2932_v6 = vand.u32 4294901760, %v2560_v1 }
 0x12d   :  { %v2642_v16 = vpop.f32.mrf.mxu1  ;;  %v774_v20 = vpop.f32.mrf.mxu0  ;;  %1710 = vmatpush.msra.mxu3 %v2466_v5  ;;  %1617 = vmatpush.msra.mxu2 %v2931_v51 }
 0x12e   :  { %v775_v56 = vadd.f32 %v774_v20, %v616_v35  ;;  %v404_v20 = vadd.f32 %v2416_v33, %v199_v23  ;;  %v207_v35 = vadd.f32 %v2616_v2, %v2414_v28 }
 0x12f   :  { %1712 = vmatpush.msra.mxu3 %v2484_v36  ;;  %1621 = vmatpush.msra.mxu2 %v2932_v6  ;;  %v507_v36 = vadd.f32 %v2587_v3, %v392_v52  ;;  %v639_v39 = vpop.f32.mrf.mxu3 }
 0x130   :  { %930 = vmatmul.f32.gmra.mxu1 %v2306_v25  ;;  %v183_v25 = vadd.f32 %v2616_v2, %v2360_v53  ;;  %v522_v52 = vadd.f32 %v521_v37, %v404_v20 }
 0x131   :  { %1714 = vmatpush.msra.mxu3 %v2502_v40  ;;  %1625 = vmatpush.msra.mxu2 %v1235_v18  ;;  %v622_v57 = vadd.f32 %v621_v17, %v507_v36  ;;  %v526_v18 = vpop.f32.mrf.mxu2 }
 0x132   :  { %v396_v40 = vadd.f32 %v2380_v14, %v183_v25  ;;  %v408_v25 = vadd.f32 %v2434_v12, %v207_v35  ;;  %v2934_v35 = vld [vmem:[#allocation14_spill] sm:$0xff] }
 0x133   :  { %1716 = vmatpush.msra.mxu3 %v2520_v34 }
 0x134   :  { %v512_v48 = vadd.f32 %v511_v55, %v396_v40 }
 0x135   :  { %v778_v5 = vpop.f32.mrf.mxu0  ;;  %v871_v58 = vpop.f32.mrf.mxu1  ;;  %1718 = vmatpush.msra.mxu3 %v2538_v61  ;;  %v191_v61 = vadd.f32 %v2616_v2, %v2378_v47 }
 0x136   :  { %v872_v1 = vadd.f32 %v871_v58, %v775_v56  ;;  %v779_v34 = vadd.f32 %v778_v5, %v622_v57  ;;  %v628_v46 = vadd.f32 %v627_v43, %v512_v48  ;;  %v640_v58 = vadd.f32 %v639_v39, %v522_v52 }
 0x137   :  { %1720 = vmatpush.msra.mxu3 %v2551_v4  ;;  %v645_v60 = vpop.f32.mrf.mxu3 }
 0x138   :  { %v934_v13 = vmax.f32 %v872_v1, 0.0 }
 0x139   :  { %1722 = vmatpush.msra.mxu3 %v2563_v15  ;;  %v400_v15 = vadd.f32 %v2398_v10, %v191_v61  ;;  %v531_v10 = vpop.f32.mrf.mxu2 }
 0x13a   :  { %v2667_v49 = vand.u32 4294901760, %v934_v13 }
 0x13b   :  { %v517_v29 = vadd.f32 %v516_v24, %v400_v15 }
 0x13c   :  { %v1015_v44 = vsub.f32 %v934_v13, %v2667_v49  ;;  %1240 = vmatmul.f32.vlgmr.msrb.gmra.mxu3 %v2667_v49 }
 0x13d   :  { %v782_v53 = vpop.f32.mrf.mxu0  ;;  %v875_v3 = vpop.f32.mrf.mxu1  ;;  %v634_v63 = vadd.f32 %v633_v38, %v517_v29 }
 0x13e   :  { %v1016_v4 = vand.u32 4294901760, %v1015_v44  ;;  %v876_v17 = vadd.f32 %v875_v3, %v779_v34  ;;  %1354 = vmatmul.f32.vlgmr.msra.gmra.mxu0 %v1015_v44  ;;  %v783_v41 = vadd.f32 %v782_v53, %v628_v46  ;;  %v215_v34 = vadd.f32 %v2616_v2, %v2432_v59 }
 0x13f   :  { %v651_v21 = vpop.f32.mrf.mxu3 }
 0x140   :  { %v935_v14 = vmax.f32 %v876_v17, 0.0  ;;  %1468 = vmatmul.f32.vlgmr.msra.gmra.mxu1 %v1016_v4  ;;  %v1017_v11 = vsub.f32 %v1015_v44, %v1016_v4  ;;  %v527_v44 = vadd.f32 %v526_v18, %v408_v25  ;;  %v412_v4 = vadd.f32 %v2452_v30, %v215_v34 }
 0x141   :  { %v536_v36 = vpop.f32.mrf.mxu2 }
 0x142   :  { %v2675_v42 = vand.u32 4294901760, %v935_v14  ;;  %v1018_v8 = vand.u32 4294901760, %v1017_v11  ;;  %v646_v48 = vadd.f32 %v645_v60, %v527_v44 }
 0x144   :  { %1019 = vmatmul.f32.vlgmr.msrb.gmra.mxu2 %v1018_v8  ;;  %1244 = vmatmul.f32.gmra.mxu3 %v2675_v42  ;;  %v1023_v47 = vsub.f32 %v935_v14, %v2675_v42  ;;  %v223_v8 = vadd.f32 %v2616_v2, %v2450_v62 }
 0x145   :  { %v786_v55 = vpop.f32.mrf.mxu0  ;;  %v879_v54 = vpop.f32.mrf.mxu1 }
 0x146   :  { %v880_v7 = vadd.f32 %v879_v54, %v783_v41  ;;  %1359 = vmatmul.f32.gmra.mxu0 %v1023_v47  ;;  %v1024_v43 = vand.u32 4294901760, %v1023_v47  ;;  %v787_v51 = vadd.f32 %v786_v55, %v634_v63  ;;  %v532_v41 = vadd.f32 %v531_v10, %v412_v4  ;;  %v2933_v63 = vld [vmem:[#allocation12_spill] sm:$0xff] }
 0x147   :  { %v657_v53 = vpop.f32.mrf.mxu3  ;;  %v416_v29 = vadd.f32 %v2470_v27, %v223_v8  ;;  %v231_v20 = vadd.f32 %v2616_v2, %v2933_v63 }
 0x148   :  { %v936_v31 = vmax.f32 %v880_v7, 0.0  ;;  %1474 = vmatmul.f32.gmra.mxu1 %v1024_v43  ;;  %v1025_v32 = vsub.f32 %v1023_v47, %v1024_v43  ;;  %v652_v23 = vadd.f32 %v651_v21, %v532_v41 }
 0x149   :  { %v541_v11 = vpop.f32.mrf.mxu2  ;;  %v420_v52 = vadd.f32 %v2934_v35, %v231_v20  ;;  %v2939_v20 = vld [vmem:[#allocation17_spill] sm:$0xff] }
 0x14a   :  { %v2682_v19 = vand.u32 4294901760, %v936_v31  ;;  %v1026_v26 = vand.u32 4294901760, %v1025_v32 }
 0x14c   :  { %1027 = vmatmul.f32.gmra.mxu2 %v1026_v26  ;;  %1248 = vmatmul.f32.gmra.mxu3 %v2682_v19  ;;  %v1031_v9 = vsub.f32 %v936_v31, %v2682_v19  ;;  %v537_v26 = vadd.f32 %v536_v36, %v416_v29 }
 0x14d   :  { %v790_v24 = vpop.f32.mrf.mxu0  ;;  %v883_v6 = vpop.f32.mrf.mxu1 }
 0x14e   :  { %v884_v56 = vadd.f32 %v883_v6, %v787_v51  ;;  %1364 = vmatmul.f32.gmra.mxu0 %v1031_v9  ;;  %v1032_v38 = vand.u32 4294901760, %v1031_v9  ;;  %v791_v57 = vadd.f32 %v790_v24, %v640_v58  ;;  %v658_v6 = vadd.f32 %v657_v53, %v537_v26 }
 0x14f   :  { %v663_v30 = vpop.f32.mrf.mxu3  ;;  %v255_v26 = vadd.f32 %v2616_v2, %v2939_v20 }
 0x150   :  { %v937_v33 = vmax.f32 %v884_v56, 0.0  ;;  %1480 = vmatmul.f32.gmra.mxu1 %v1032_v38  ;;  %v1033_v5 = vsub.f32 %v1031_v9, %v1032_v38 }
 0x151   :  { %v546_v51 = vpop.f32.mrf.mxu2 }
 0x152   :  { %v2689_v1 = vand.u32 4294901760, %v937_v33  ;;  %v1034_v13 = vand.u32 4294901760, %v1033_v5 }
 0x154   :  { %1035 = vmatmul.f32.gmra.mxu2 %v1034_v13  ;;  %1252 = vmatmul.f32.gmra.mxu3 %v2689_v1  ;;  %v1039_v28 = vsub.f32 %v937_v33, %v2689_v1  ;;  %v2935_v13 = vld [vmem:[#allocation13_spill] sm:$0xff] }
 0x155   :  { %v794_v37 = vpop.f32.mrf.mxu0  ;;  %v887_v40 = vpop.f32.mrf.mxu1 }
 0x156   :  { %v888_v39 = vadd.f32 %v887_v40, %v791_v57  ;;  %1369 = vmatmul.f32.gmra.mxu0 %v1039_v28  ;;  %v1040_v12 = vand.u32 4294901760, %v1039_v28  ;;  %v795_v46 = vadd.f32 %v794_v37, %v646_v48  ;;  %v239_v57 = vadd.f32 %v2616_v2, %v2935_v13 }
 0x157   :  { %v669_v56 = vpop.f32.mrf.mxu3 }
 0x158   :  { %v938_v3 = vmax.f32 %v888_v39, 0.0  ;;  %1486 = vmatmul.f32.gmra.mxu1 %v1040_v12  ;;  %v1041_v61 = vsub.f32 %v1039_v28, %v1040_v12  ;;  %v542_v28 = vadd.f32 %v541_v11, %v420_v52  ;;  %v2936_v12 = vld [vmem:[#allocation16_spill] sm:$0xff] }
 0x159   :  { %v551_v34 = vpop.f32.mrf.mxu2  ;;  %v2940_v52 = vld [vmem:[#allocation20_spill] sm:$0xff] }
 0x15a   :  { %v2696_v17 = vand.u32 4294901760, %v938_v3  ;;  %v1042_v14 = vand.u32 4294901760, %v1041_v61  ;;  %v664_v39 = vadd.f32 %v663_v30, %v542_v28  ;;  %v2941_v28 = vld [vmem:[#allocation19_spill] sm:$0xff] }
 0x15c   :  { %1043 = vmatmul.f32.gmra.mxu2 %v1042_v14  ;;  %1256 = vmatmul.f32.gmra.mxu3 %v2696_v17  ;;  %v1047_v59 = vsub.f32 %v938_v3, %v2696_v17  ;;  %v424_v3 = vadd.f32 %v2936_v12, %v239_v57 }
 0x15d   :  { %v798_v18 = vpop.f32.mrf.mxu0  ;;  %v891_v15 = vpop.f32.mrf.mxu1 }
 0x15e   :  { %v892_v47 = vadd.f32 %v891_v15, %v795_v46  ;;  %1374 = vmatmul.f32.gmra.mxu0 %v1047_v59  ;;  %v1048_v60 = vand.u32 4294901760, %v1047_v59  ;;  %v799_v31 = vadd.f32 %v798_v18, %v652_v23  ;;  %v2937_v18 = vld [vmem:[#allocation15_spill] sm:$0xff]  ;;  %v547_v8 = vadd.f32 %v546_v51, %v424_v3 }
 0x15f   :  { %v675_v4 = vpop.f32.mrf.mxu3  ;;  %v247_v15 = vadd.f32 %v2616_v2, %v2937_v18 }
 0x160   :  { %v939_v55 = vmax.f32 %v892_v47, 0.0  ;;  %1492 = vmatmul.f32.gmra.mxu1 %v1048_v60  ;;  %v1049_v54 = vsub.f32 %v1047_v59, %v1048_v60 }
 0x161   :  { %v556_v29 = vpop.f32.mrf.mxu2 }
 0x162   :  { %v2703_v7 = vand.u32 4294901760, %v939_v55  ;;  %v1050_v43 = vand.u32 4294901760, %v1049_v54  ;;  %v2938_v54 = vld [vmem:[#allocation18_spill] sm:$0xff] }
 0x163   :  { %v428_v23 = vadd.f32 %v2938_v54, %v247_v15 }
 0x164   :  { %1051 = vmatmul.f32.gmra.mxu2 %v1050_v43  ;;  %1260 = vmatmul.f32.gmra.mxu3 %v2703_v7  ;;  %v1055_v62 = vsub.f32 %v939_v55, %v2703_v7  ;;  %v670_v55 = vadd.f32 %v669_v56, %v547_v8  ;;  %v432_v56 = vadd.f32 %v2940_v52, %v255_v26  ;;  %v2943_v8 = vld [vmem:[#allocation21_spill] sm:$0xff] }
 0x165   :  { %v802_v10 = vpop.f32.mrf.mxu0  ;;  %v895_v32 = vpop.f32.mrf.mxu1  ;;  %v552_v51 = vadd.f32 %v551_v34, %v428_v23 }
 0x166   :  { %v896_v9 = vadd.f32 %v895_v32, %v799_v31  ;;  %1379 = vmatmul.f32.gmra.mxu0 %v1055_v62  ;;  %v1056_v21 = vand.u32 4294901760, %v1055_v62  ;;  %v803_v5 = vadd.f32 %v802_v10, %v658_v6 }
 0x167   :  { %v676_v35 = vadd.f32 %v675_v4, %v552_v51 }
 0x168   :  { %v940_v27 = vmax.f32 %v896_v9, 0.0  ;;  %1498 = vmatmul.f32.gmra.mxu1 %v1056_v21  ;;  %v1057_v24 = vsub.f32 %v1055_v62, %v1056_v21 }
 0x16a   :  { %v2710_v38 = vand.u32 4294901760, %v940_v27  ;;  %v1058_v33 = vand.u32 4294901760, %v1057_v24 }
 0x16c   :  { %1059 = vmatmul.f32.gmra.mxu2 %v1058_v33  ;;  %1264 = vmatmul.f32.gmra.mxu3 %v2710_v38  ;;  %v1063_v58 = vsub.f32 %v940_v27, %v2710_v38  ;;  %v681_v27 = vpop.f32.mrf.mxu3 }
 0x16d   :  { %v806_v25 = vpop.f32.mrf.mxu0  ;;  %v899_v36 = vpop.f32.mrf.mxu1 }
 0x16e   :  { %v900_v37 = vadd.f32 %v899_v36, %v803_v5  ;;  %1384 = vmatmul.f32.gmra.mxu0 %v1063_v58  ;;  %v1064_v40 = vand.u32 4294901760, %v1063_v58  ;;  %v807_v14 = vadd.f32 %v806_v25, %v664_v39 }
 0x170   :  { %v941_v44 = vmax.f32 %v900_v37, 0.0  ;;  %1504 = vmatmul.f32.gmra.mxu1 %v1064_v40  ;;  %v1065_v53 = vsub.f32 %v1063_v58, %v1064_v40  ;;  %v561_v58 = vpop.f32.mrf.mxu2  ;;  %v263_v37 = vadd.f32 %v2616_v2, %v2941_v28  ;;  %v557_v40 = vadd.f32 %v556_v29, %v432_v56 }
 0x172   :  { %v2717_v61 = vand.u32 4294901760, %v941_v44  ;;  %v1066_v48 = vand.u32 4294901760, %v1065_v53  ;;  %v682_v3 = vadd.f32 %v681_v27, %v557_v40 }
 0x174   :  { %1067 = vmatmul.f32.gmra.mxu2 %v1066_v48  ;;  %1268 = vmatmul.f32.gmra.mxu3 %v2717_v61  ;;  %v1071_v11 = vsub.f32 %v941_v44, %v2717_v61  ;;  %v687_v12 = vpop.f32.mrf.mxu3  ;;  %v2942_v48 = vld [vmem:[#allocation22_spill] sm:$0xff] }
 0x175   :  { %v810_v46 = vpop.f32.mrf.mxu0  ;;  %v903_v59 = vpop.f32.mrf.mxu1  ;;  %v436_v4 = vadd.f32 %v2942_v48, %v263_v37 }
 0x176   :  { %v904_v41 = vadd.f32 %v903_v59, %v807_v14  ;;  %1389 = vmatmul.f32.gmra.mxu0 %v1071_v11  ;;  %v1072_v47 = vand.u32 4294901760, %v1071_v11  ;;  %v811_v62 = vadd.f32 %v810_v46, %v670_v55 }
 0x178   :  { %v942_v60 = vmax.f32 %v904_v41, 0.0  ;;  %1510 = vmatmul.f32.gmra.mxu1 %v1072_v47  ;;  %v1073_v30 = vsub.f32 %v1071_v11, %v1072_v47  ;;  %v271_v41 = vadd.f32 %v2616_v2, %v2943_v8  ;;  %v562_v47 = vadd.f32 %v561_v58, %v436_v4  ;;  %v566_v55 = vpop.f32.mrf.mxu2 }
 0x17a   :  { %v2724_v43 = vand.u32 4294901760, %v942_v60  ;;  %v1074_v31 = vand.u32 4294901760, %v1073_v30  ;;  %v688_v29 = vadd.f32 %v687_v12, %v562_v47 }
 0x17c   :  { %v1079_v10 = vsub.f32 %v942_v60, %v2724_v43  ;;  %1075 = vmatmul.f32.gmra.mxu2 %v1074_v31  ;;  %1272 = vmatmul.f32.gmra.mxu3 %v2724_v43  ;;  %v440_v31 = vadd.f32 %v2601_v50, %v271_v41 }
 0x17d   :  { %v814_v32 = vpop.f32.mrf.mxu0  ;;  %v907_v63 = vpop.f32.mrf.mxu1 }
 0x17e   :  { %v908_v9 = vadd.f32 %v907_v63, %v811_v62  ;;  %1394 = vmatmul.f32.gmra.mxu0 %v1079_v10  ;;  %v1080_v21 = vand.u32 4294901760, %v1079_v10  ;;  %v815_v25 = vadd.f32 %v814_v32, %v676_v35  ;;  %v693_v32 = vpop.f32.mrf.mxu3 }
 0x180   :  { %v943_v24 = vmax.f32 %v908_v9, 0.0  ;;  %1516 = vmatmul.f32.gmra.mxu1 %v1080_v21  ;;  %v1081_v6 = vsub.f32 %v1079_v10, %v1080_v21  ;;  %v279_v9 = vadd.f32 %v2616_v2, %v2599_v0  ;;  %v567_v21 = vadd.f32 %v566_v55, %v440_v31  ;;  %v571_v35 = vpop.f32.mrf.mxu2 }
 0x182   :  { %v2731_v33 = vand.u32 4294901760, %v943_v24  ;;  %v1082_v5 = vand.u32 4294901760, %v1081_v6  ;;  %v694_v52 = vadd.f32 %v693_v32, %v567_v21  ;;  %v444_v56 = vadd.f32 %v2623_v22, %v279_v9 }
 0x184   :  { %v1087_v36 = vsub.f32 %v943_v24, %v2731_v33  ;;  %1083 = vmatmul.f32.gmra.mxu2 %v1082_v5  ;;  %1276 = vmatmul.f32.gmra.mxu3 %v2731_v33  ;;  %v572_v28 = vadd.f32 %v571_v35, %v444_v56 }
 0x185   :  { %v818_v13 = vpop.f32.mrf.mxu0  ;;  %v911_v57 = vpop.f32.mrf.mxu1 }
 0x186   :  { %v912_v34 = vadd.f32 %v911_v57, %v815_v25  ;;  %1399 = vmatmul.f32.gmra.mxu0 %v1087_v36  ;;  %v1088_v44 = vand.u32 4294901760, %v1087_v36  ;;  %v819_v46 = vadd.f32 %v818_v13, %v682_v3  ;;  %v699_v0 = vpop.f32.mrf.mxu3  ;;  %v287_v57 = vadd.f32 %v2616_v2, %v2621_v45 }
 0x188   :  { %v944_v53 = vmax.f32 %v912_v34, 0.0  ;;  %1522 = vmatmul.f32.gmra.mxu1 %v1088_v44  ;;  %v1089_v39 = vsub.f32 %v1087_v36, %v1088_v44  ;;  %v576_v48 = vpop.f32.mrf.mxu2 }
 0x18a   :  { %v2738_v14 = vand.u32 4294901760, %v944_v53  ;;  %v1090_v11 = vand.u32 4294901760, %v1089_v39  ;;  %v448_v39 = vadd.f32 %v2642_v16, %v287_v57 }
 0x18c   :  { %v1095_v59 = vsub.f32 %v944_v53, %v2738_v14  ;;  %1091 = vmatmul.f32.gmra.mxu2 %v1090_v11  ;;  %1280 = vmatmul.f32.gmra.mxu3 %v2738_v14  ;;  %v700_v53 = vadd.f32 %v699_v0, %v572_v28  ;;  %v577_v45 = vadd.f32 %v576_v48, %v448_v39 }
 0x18d   :  { %v822_v18 = vpop.f32.mrf.mxu0  ;;  %v915_v15 = vpop.f32.mrf.mxu1 }
 0x18e   :  { %v916_v60 = vadd.f32 %v915_v15, %v819_v46  ;;  %1404 = vmatmul.f32.gmra.mxu0 %v1095_v59  ;;  %v1096_v30 = vand.u32 4294901760, %v1095_v59  ;;  %v823_v63 = vadd.f32 %v822_v18, %v688_v29  ;;  %v705_v18 = vpop.f32.mrf.mxu3 }
 0x18f   :  { %v706_v41 = vadd.f32 %v705_v18, %v577_v45 }
 0x190   :  { %v945_v54 = vmax.f32 %v916_v60, 0.0  ;;  %1528 = vmatmul.f32.gmra.mxu1 %v1096_v30  ;;  %v1097_v23 = vsub.f32 %v1095_v59, %v1096_v30 }
 0x192   :  { %v2745_v62 = vand.u32 4294901760, %v945_v54  ;;  %v1098_v10 = vand.u32 4294901760, %v1097_v23 }
 0x194   :  { %v1103_v20 = vsub.f32 %v945_v54, %v2745_v62  ;;  %1099 = vmatmul.f32.gmra.mxu2 %v1098_v10  ;;  %1284 = vmatmul.f32.gmra.mxu3 %v2745_v62 }
 0x195   :  { %v826_v26 = vpop.f32.mrf.mxu0  ;;  %v919_v51 = vpop.f32.mrf.mxu1 }
 0x196   :  { %v920_v27 = vadd.f32 %v919_v51, %v823_v63  ;;  %1409 = vmatmul.f32.gmra.mxu0 %v1103_v20  ;;  %v1104_v24 = vand.u32 4294901760, %v1103_v20  ;;  %v827_v25 = vadd.f32 %v826_v26, %v694_v52 }
 0x198   :  { %v946_v50 = vmax.f32 %v920_v27, 0.0  ;;  %1534 = vmatmul.f32.gmra.mxu1 %v1104_v24  ;;  %v1105_v6 = vsub.f32 %v1103_v20, %v1104_v24 }
 0x19a   :  { %v2752_v5 = vand.u32 4294901760, %v946_v50  ;;  %v1106_v58 = vand.u32 4294901760, %v1105_v6 }
 0x19c   :  { %v1111_v36 = vsub.f32 %v946_v50, %v2752_v5  ;;  %1107 = vmatmul.f32.gmra.mxu2 %v1106_v58  ;;  %1288 = vmatmul.f32.gmra.mxu3 %v2752_v5 }
 0x19d   :  { %v923_v13 = vpop.f32.mrf.mxu1  ;;  %v830_v34 = vpop.f32.mrf.mxu0 }
 0x19e   :  { %v924_v37 = vadd.f32 %v923_v13, %v827_v25  ;;  %1414 = vmatmul.f32.gmra.mxu0 %v1111_v36  ;;  %v1112_v40 = vand.u32 4294901760, %v1111_v36  ;;  %v831_v4 = vadd.f32 %v830_v34, %v700_v53 }
 0x1a0   :  { %v947_v22 = vmax.f32 %v924_v37, 0.0  ;;  %1540 = vmatmul.f32.gmra.mxu1 %v1112_v40  ;;  %v1113_v44 = vsub.f32 %v1111_v36, %v1112_v40 }
 0x1a2   :  { %v2759_v12 = vand.u32 4294901760, %v947_v22  ;;  %v1114_v3 = vand.u32 4294901760, %v1113_v44 }
 0x1a4   :  { %v1119_v11 = vsub.f32 %v947_v22, %v2759_v12  ;;  %1115 = vmatmul.f32.gmra.mxu2 %v1114_v3  ;;  %1292 = vmatmul.f32.gmra.mxu3 %v2759_v12 }
 0x1a5   :  { %v927_v2 = vpop.f32.mrf.mxu1  ;;  %v834_v16 = vpop.f32.mrf.mxu0 }
 0x1a6   :  { %v928_v46 = vadd.f32 %v927_v2, %v831_v4  ;;  %1419 = vmatmul.f32.gmra.mxu0 %v1119_v11  ;;  %v1120_v59 = vand.u32 4294901760, %v1119_v11  ;;  %v835_v30 = vadd.f32 %v834_v16, %v706_v41 }
 0x1a8   :  { %v948_v15 = vmax.f32 %v928_v46, 0.0  ;;  %1546 = vmatmul.f32.gmra.mxu1 %v1120_v59  ;;  %v1121_v8 = vsub.f32 %v1119_v11, %v1120_v59 }
 0x1aa   :  { %v2763_v47 = vand.u32 4294901760, %v948_v15  ;;  %v1122_v60 = vand.u32 4294901760, %v1121_v8 }
 0x1ac   :  { %v1127_v55 = vsub.f32 %v948_v15, %v2763_v47  ;;  %1123 = vmatmul.f32.gmra.mxu2 %v1122_v60  ;;  %1296 = vmatmul.f32.gmra.mxu3 %v2763_v47 }
 0x1ad   :  { %v931_v54 = vpop.f32.mrf.mxu1 }
 0x1ae   :  { %v932_v23 = vadd.f32 %v931_v54, %v835_v30  ;;  %1424 = vmatmul.f32.gmra.mxu0 %v1127_v55  ;;  %v1128_v29 = vand.u32 4294901760, %v1127_v55 }
 0x1b0   :  { %v949_v31 = vmax.f32 %v932_v23, 0.0  ;;  %1552 = vmatmul.f32.gmra.mxu1 %v1128_v29  ;;  %v1129_v10 = vsub.f32 %v1127_v55, %v1128_v29 }
 0x1b2   :  { %v2767_v32 = vand.u32 4294901760, %v949_v31  ;;  %v1130_v63 = vand.u32 4294901760, %v1129_v10 }
 0x1b4   :  { %v1135_v20 = vsub.f32 %v949_v31, %v2767_v32  ;;  %1131 = vmatmul.f32.gmra.mxu2 %v1130_v63  ;;  %1300 = vmatmul.f32.gmra.mxu3 %v2767_v32 }
 0x1b6   :  { %1429 = vmatmul.f32.gmra.mxu0 %v1135_v20  ;;  %v1136_v26 = vand.u32 4294901760, %v1135_v20 }
 0x1b8   :  { %1558 = vmatmul.f32.gmra.mxu1 %v1136_v26  ;;  %v1137_v51 = vsub.f32 %v1135_v20, %v1136_v26 }
 0x1ba   :  { %v1138_v9 = vand.u32 4294901760, %v1137_v51  ;;  %v2839_v51 = vld [vmem:[%s2882_s4] ss:$0 sm:$0xff]  ;;  %s1955_s4 = smov [#allocation8]  }
 0x1bb   :  { %v1355_v45 = vpop.f32.mrf.mxu0  ;;  %s1824_s10 = sshll.u32 %s1955_s4, 4  ;;  %s1825_s10 = int_to_ptr.vmem [resolvable:$true] %s1824_s10 }
 0x1bc   :  { %1139 = vmatmul.f32.gmra.mxu2 %v1138_v9  ;;  %1724 = vmatmul.f32.vlgmr.msra.gmra.mxu3 %v2667_v49 }
 0x1bf   :  { %v1241_v21 = vpop.f32.mrf.mxu3 }
 0x1c3   :  { %v1360_v15 = vpop.f32.mrf.mxu0 }
 0x1c4   :  { %1627 = vmatmul.f32.vlgmr.msra.gmra.mxu2 %v2667_v49  ;;  %1728 = vmatmul.f32.gmra.mxu3 %v2675_v42 }
 0x1c7   :  { %v1020_v27 = vpop.f32.mrf.mxu2  ;;  %v1245_v24 = vpop.f32.mrf.mxu3 }
 0x1c8   :  { %v2774_v50 = vadd.f32 %v1241_v21, %v1020_v27 }
 0x1ca   :  { %v1356_v10 = vadd.f32 %v1355_v45, %v2774_v50 }
 0x1cc   :  { %1631 = vmatmul.f32.gmra.mxu2 %v2675_v42  ;;  %1732 = vmatmul.f32.gmra.mxu3 %v2682_v19 }
 0x1cf   :  { %v1028_v6 = vpop.f32.mrf.mxu2  ;;  %v1249_v35 = vpop.f32.mrf.mxu3 }
 0x1d0   :  { %v2778_v52 = vadd.f32 %v1245_v24, %v1028_v6 }
 0x1d2   :  { %v1361_v21 = vadd.f32 %v1360_v15, %v2778_v52 }
 0x1d4   :  { %1635 = vmatmul.f32.gmra.mxu2 %v2682_v19  ;;  %1736 = vmatmul.f32.gmra.mxu3 %v2689_v1 }
 0x1d7   :  { %v1036_v56 = vpop.f32.mrf.mxu2  ;;  %v1253_v49 = vpop.f32.mrf.mxu3 }
 0x1d8   :  { %v2782_v58 = vadd.f32 %v1249_v35, %v1036_v56 }
 0x1dc   :  { %1639 = vmatmul.f32.gmra.mxu2 %v2689_v1  ;;  %1740 = vmatmul.f32.gmra.mxu3 %v2696_v17 }
 0x1df   :  { %v1044_v25 = vpop.f32.mrf.mxu2  ;;  %v1257_v42 = vpop.f32.mrf.mxu3 }
 0x1e0   :  { %v2786_v36 = vadd.f32 %v1253_v49, %v1044_v25 }
 0x1e4   :  { %1643 = vmatmul.f32.gmra.mxu2 %v2696_v17  ;;  %1744 = vmatmul.f32.gmra.mxu3 %v2703_v7 }
 0x1e7   :  { %v1052_v0 = vpop.f32.mrf.mxu2  ;;  %v1261_v19 = vpop.f32.mrf.mxu3 }
 0x1e8   :  { %v2790_v13 = vadd.f32 %v1257_v42, %v1052_v0 }
 0x1ec   :  { %1647 = vmatmul.f32.gmra.mxu2 %v2703_v7  ;;  %1748 = vmatmul.f32.gmra.mxu3 %v2710_v38 }
 0x1ef   :  { %v1060_v57 = vpop.f32.mrf.mxu2  ;;  %v1265_v1 = vpop.f32.mrf.mxu3 }
 0x1f0   :  { %v2794_v28 = vadd.f32 %v1261_v19, %v1060_v57 }
 0x1f4   :  { %1651 = vmatmul.f32.gmra.mxu2 %v2710_v38  ;;  %1752 = vmatmul.f32.gmra.mxu3 %v2717_v61 }
 0x1f7   :  { %v1068_v37 = vpop.f32.mrf.mxu2  ;;  %v1269_v17 = vpop.f32.mrf.mxu3 }
 0x1f8   :  { %v2798_v40 = vadd.f32 %v1265_v1, %v1068_v37 }
 0x1fc   :  { %1655 = vmatmul.f32.gmra.mxu2 %v2717_v61  ;;  %1756 = vmatmul.f32.gmra.mxu3 %v2724_v43 }
 0x1ff   :  { %v1076_v34 = vpop.f32.mrf.mxu2  ;;  %v1273_v7 = vpop.f32.mrf.mxu3 }
 0x200   :  { %v2802_v22 = vadd.f32 %v1269_v17, %v1076_v34 }
 0x204   :  { %1659 = vmatmul.f32.gmra.mxu2 %v2724_v43  ;;  %1760 = vmatmul.f32.gmra.mxu3 %v2731_v33 }
 0x207   :  { %v1084_v44 = vpop.f32.mrf.mxu2  ;;  %v1277_v38 = vpop.f32.mrf.mxu3 }
 0x208   :  { %v2806_v53 = vadd.f32 %v1273_v7, %v1084_v44 }
 0x20c   :  { %1663 = vmatmul.f32.gmra.mxu2 %v2731_v33  ;;  %1764 = vmatmul.f32.gmra.mxu3 %v2738_v14 }
 0x20f   :  { %v1092_v39 = vpop.f32.mrf.mxu2  ;;  %v1281_v61 = vpop.f32.mrf.mxu3 }
 0x210   :  { %v2810_v3 = vadd.f32 %v1277_v38, %v1092_v39 }
 0x214   :  { %1667 = vmatmul.f32.gmra.mxu2 %v2738_v14  ;;  %1768 = vmatmul.f32.gmra.mxu3 %v2745_v62  ;;  %v1469_v14 = vpop.f32.mrf.mxu1 }
 0x215   :  { %v1470_v20 = vadd.f32 %v1469_v14, %v1356_v10 }
 0x217   :  { %v1100_v48 = vpop.f32.mrf.mxu2  ;;  %v1285_v43 = vpop.f32.mrf.mxu3 }
 0x218   :  { %v2814_v4 = vadd.f32 %v1281_v61, %v1100_v48 }
 0x21c   :  { %1671 = vmatmul.f32.gmra.mxu2 %v2745_v62  ;;  %1772 = vmatmul.f32.gmra.mxu3 %v2752_v5  ;;  %v1475_v16 = vpop.f32.mrf.mxu1 }
 0x21d   :  { %v1476_v35 = vadd.f32 %v1475_v16, %v1361_v21 }
 0x21f   :  { %v1108_v11 = vpop.f32.mrf.mxu2  ;;  %v1289_v33 = vpop.f32.mrf.mxu3 }
 0x220   :  { %v2818_v2 = vadd.f32 %v1285_v43, %v1108_v11 }
 0x224   :  { %1675 = vmatmul.f32.gmra.mxu2 %v2752_v5  ;;  %1776 = vmatmul.f32.gmra.mxu3 %v2759_v12  ;;  %v1365_v5 = vpop.f32.mrf.mxu0  ;;  %v1481_v54 = vpop.f32.mrf.mxu1 }
 0x225   :  { %v1366_v25 = vadd.f32 %v1365_v5, %v2782_v58 }
 0x227   :  { %v1116_v46 = vpop.f32.mrf.mxu2  ;;  %v1293_v59 = vpop.f32.mrf.mxu3  ;;  %v1482_v57 = vadd.f32 %v1481_v54, %v1366_v25 }
 0x228   :  { %v2822_v18 = vadd.f32 %v1289_v33, %v1116_v46 }
 0x22c   :  { %1679 = vmatmul.f32.gmra.mxu2 %v2759_v12  ;;  %1780 = vmatmul.f32.gmra.mxu3 %v2763_v47  ;;  %v1370_v29 = vpop.f32.mrf.mxu0  ;;  %v1487_v63 = vpop.f32.mrf.mxu1 }
 0x22d   :  { %v1371_v34 = vadd.f32 %v1370_v29, %v2786_v36 }
 0x22f   :  { %v1124_v62 = vpop.f32.mrf.mxu2  ;;  %v1297_v8 = vpop.f32.mrf.mxu3  ;;  %v1488_v39 = vadd.f32 %v1487_v63, %v1371_v34 }
 0x230   :  { %v2826_v41 = vadd.f32 %v1293_v59, %v1124_v62 }
 0x234   :  { %1683 = vmatmul.f32.gmra.mxu2 %v2763_v47  ;;  %1784 = vmatmul.f32.gmra.mxu3 %v2767_v32  ;;  %v1493_v6 = vpop.f32.mrf.mxu1 }
 0x237   :  { %v1132_v60 = vpop.f32.mrf.mxu2  ;;  %v1301_v30 = vpop.f32.mrf.mxu3 }
 0x238   :  { %v2830_v55 = vadd.f32 %v1297_v8, %v1132_v60 }
 0x23c   :  { %1687 = vmatmul.f32.gmra.mxu2 %v2767_v32  ;;  %v1375_v32 = vpop.f32.mrf.mxu0  ;;  %v1499_v37 = vpop.f32.mrf.mxu1 }
 0x23d   :  { %v1376_v43 = vadd.f32 %v1375_v32, %v2790_v13 }
 0x23f   :  { %v1140_v12 = vpop.f32.mrf.mxu2  ;;  %v1725_v23 = vpop.f32.mrf.mxu3  ;;  %v1494_v14 = vadd.f32 %v1493_v6, %v1376_v43 }
 0x240   :  { %v2833_v31 = vadd.f32 %v1301_v30, %v1140_v12 }
 0x244   :  { %v1380_v0 = vpop.f32.mrf.mxu0  ;;  %v1505_v11 = vpop.f32.mrf.mxu1 }
 0x245   :  { %v1381_v62 = vadd.f32 %v1380_v0, %v2794_v28 }
 0x247   :  { %v1628_v47 = vpop.f32.mrf.mxu2  ;;  %v1729_v26 = vpop.f32.mrf.mxu3  ;;  %v1500_v60 = vadd.f32 %v1499_v37, %v1381_v62 }
 0x248   :  { %v1629_v9 = vadd.f32 %v1628_v47, %v1470_v20 }
 0x24a   :  { %v1726_v27 = vadd.f32 %v1725_v23, %v1629_v9 }
 0x24c   :  { %v1788_v24 = vadd.f32 %v2839_v51, %v1726_v27  ;;  %v1385_v38 = vpop.f32.mrf.mxu0  ;;  %v1511_v16 = vpop.f32.mrf.mxu1 }
 0x24d   :  { %v1386_v12 = vadd.f32 %v1385_v38, %v2798_v40 }
 0x24e   :  { %1804 = vst [vmem:[#allocation8] sm:$0xff] %v1788_v24 }
 0x24f   :  { %v1632_v50 = vpop.f32.mrf.mxu2  ;;  %v1733_v56 = vpop.f32.mrf.mxu3  ;;  %v1506_v20 = vadd.f32 %v1505_v11, %v1386_v12 }
 0x250   :  { %v1633_v49 = vadd.f32 %v1632_v50, %v1476_v35 }
 0x252   :  { %v1730_v42 = vadd.f32 %v1729_v26, %v1633_v49 }
 0x254   :  { %v1789_v19 = vadd.f32 %v2839_v51, %v1730_v42  ;;  %v1390_v36 = vpop.f32.mrf.mxu0  ;;  %v1517_v63 = vpop.f32.mrf.mxu1 }
 0x255   :  { %v1391_v9 = vadd.f32 %v1390_v36, %v2802_v22 }
 0x256   :  { %1805 = vst [vmem:[#allocation8 + $0x8] sm:$0xff] %v1789_v19 }
 0x257   :  { %v1636_v1 = vpop.f32.mrf.mxu2  ;;  %v1737_v52 = vpop.f32.mrf.mxu3  ;;  %v1512_v24 = vadd.f32 %v1511_v16, %v1391_v9 }
 0x258   :  { %v1637_v17 = vadd.f32 %v1636_v1, %v1482_v57 }
 0x25a   :  { %v1734_v7 = vadd.f32 %v1733_v56, %v1637_v17 }
 0x25c   :  { %v1790_v44 = vadd.f32 %v2839_v51, %v1734_v7  ;;  %v1395_v23 = vpop.f32.mrf.mxu0  ;;  %v1523_v50 = vpop.f32.mrf.mxu1 }
 0x25d   :  { %v1396_v56 = vadd.f32 %v1395_v23, %v2806_v53 }
 0x25e   :  { %1806 = vst [vmem:[#allocation8 + $0x10] sm:$0xff] %v1790_v44 }
 0x25f   :  { %v1640_v61 = vpop.f32.mrf.mxu2  ;;  %v1741_v58 = vpop.f32.mrf.mxu3  ;;  %v1518_v0 = vadd.f32 %v1517_v63, %v1396_v56 }
 0x260   :  { %v1641_v48 = vadd.f32 %v1640_v61, %v1488_v39 }
 0x262   :  { %v1738_v33 = vadd.f32 %v1737_v52, %v1641_v48 }
 0x264   :  { %v1791_v45 = vadd.f32 %v2839_v51, %v1738_v33  ;;  %v1400_v32 = vpop.f32.mrf.mxu0  ;;  %v1529_v37 = vpop.f32.mrf.mxu1 }
 0x265   :  { %v1401_v1 = vadd.f32 %v1400_v32, %v2810_v3 }
 0x266   :  { %1807 = vst [vmem:[#allocation8 + $0x18] sm:$0xff] %v1791_v45 }
 0x267   :  { %v1644_v46 = vpop.f32.mrf.mxu2  ;;  %v1745_v59 = vpop.f32.mrf.mxu3  ;;  %v1524_v34 = vadd.f32 %v1523_v50, %v1401_v1 }
 0x268   :  { %v1645_v15 = vadd.f32 %v1644_v46, %v1494_v14 }
 0x26a   :  { %v1742_v8 = vadd.f32 %v1741_v58, %v1645_v15 }
 0x26c   :  { %v1792_v5 = vadd.f32 %v2839_v51, %v1742_v8  ;;  %v1405_v42 = vpop.f32.mrf.mxu0  ;;  %v1535_v48 = vpop.f32.mrf.mxu1 }
 0x26d   :  { %v1406_v39 = vadd.f32 %v1405_v42, %v2814_v4 }
 0x26e   :  { %1808 = vst [vmem:[#allocation8 + $0x20] sm:$0xff] %v1792_v5 }
 0x26f   :  { %v1648_v30 = vpop.f32.mrf.mxu2  ;;  %v1749_v13 = vpop.f32.mrf.mxu3  ;;  %v1530_v43 = vadd.f32 %v1529_v37, %v1406_v39 }
 0x270   :  { %v1649_v54 = vadd.f32 %v1648_v30, %v1500_v60 }
 0x272   :  { %v1746_v29 = vadd.f32 %v1745_v59, %v1649_v54 }
 0x274   :  { %v1793_v10 = vadd.f32 %v2839_v51, %v1746_v29  ;;  %v1410_v38 = vpop.f32.mrf.mxu0  ;;  %v1541_v15 = vpop.f32.mrf.mxu1 }
 0x275   :  { %v1411_v45 = vadd.f32 %v1410_v38, %v2818_v2 }
 0x276   :  { %1809 = vst [vmem:[#allocation8 + $0x28] sm:$0xff] %v1793_v10 }
 0x277   :  { %v1652_v47 = vpop.f32.mrf.mxu2  ;;  %v1753_v28 = vpop.f32.mrf.mxu3  ;;  %v1536_v36 = vadd.f32 %v1535_v48, %v1411_v45 }
 0x278   :  { %v1653_v26 = vadd.f32 %v1652_v47, %v1506_v20 }
 0x27a   :  { %v1750_v21 = vadd.f32 %v1749_v13, %v1653_v26 }
 0x27c   :  { %v1794_v27 = vadd.f32 %v2839_v51, %v1750_v21  ;;  %v1415_v46 = vpop.f32.mrf.mxu0  ;;  %v1547_v12 = vpop.f32.mrf.mxu1 }
 0x27d   :  { %v1416_v8 = vadd.f32 %v1415_v46, %v2822_v18 }
 0x27e   :  { %1810 = vst [vmem:[#allocation8 + $0x30] sm:$0xff] %v1794_v27 }
 0x27f   :  { %v1656_v6 = vpop.f32.mrf.mxu2  ;;  %v1757_v40 = vpop.f32.mrf.mxu3  ;;  %v1542_v13 = vadd.f32 %v1541_v15, %v1416_v8 }
 0x280   :  { %v1657_v35 = vadd.f32 %v1656_v6, %v1512_v24 }
 0x282   :  { %v1754_v49 = vadd.f32 %v1753_v28, %v1657_v35 }
 0x284   :  { %v1795_v25 = vadd.f32 %v2839_v51, %v1754_v49  ;;  %v1420_v30 = vpop.f32.mrf.mxu0  ;;  %v1553_v21 = vpop.f32.mrf.mxu1 }
 0x285   :  { %v1421_v23 = vadd.f32 %v1420_v30, %v2826_v41 }
 0x286   :  { %1811 = vst [vmem:[#allocation8 + $0x38] sm:$0xff] %v1795_v25 }
 0x287   :  { %v1660_v19 = vpop.f32.mrf.mxu2  ;;  %v1761_v22 = vpop.f32.mrf.mxu3  ;;  %v1548_v20 = vadd.f32 %v1547_v12, %v1421_v23 }
 0x288   :  { %v1661_v57 = vadd.f32 %v1660_v19, %v1518_v0 }
 0x28a   :  { %v1758_v52 = vadd.f32 %v1757_v40, %v1661_v57 }
 0x28c   :  { %v1796_v17 = vadd.f32 %v2839_v51, %v1758_v52  ;;  %v1425_v47 = vpop.f32.mrf.mxu0  ;;  %v1559_v49 = vpop.f32.mrf.mxu1 }
 0x28d   :  { %v1426_v26 = vadd.f32 %v1425_v47, %v2830_v55 }
 0x28e   :  { %1812 = vst [vmem:[#allocation8 + $0x40] sm:$0xff] %v1796_v17 }
 0x28f   :  { %v1664_v7 = vpop.f32.mrf.mxu2  ;;  %v1765_v44 = vpop.f32.mrf.mxu3  ;;  %v1554_v27 = vadd.f32 %v1553_v21, %v1426_v26 }
 0x290   :  { %v1665_v53 = vadd.f32 %v1664_v7, %v1524_v34 }
 0x292   :  { %v1762_v61 = vadd.f32 %v1761_v22, %v1665_v53 }
 0x294   :  { %v1797_v58 = vadd.f32 %v2839_v51, %v1762_v61  ;;  %v1430_v40 = vpop.f32.mrf.mxu0 }
 0x295   :  { %v1431_v35 = vadd.f32 %v1430_v40, %v2833_v31 }
 0x296   :  { %1813 = vst [vmem:[#allocation8 + $0x48] sm:$0xff] %v1797_v58 }
 0x297   :  { %v1668_v11 = vpop.f32.mrf.mxu2  ;;  %v1769_v33 = vpop.f32.mrf.mxu3  ;;  %v1560_v25 = vadd.f32 %v1559_v49, %v1431_v35 }
 0x298   :  { %v1669_v3 = vadd.f32 %v1668_v11, %v1530_v43 }
 0x29a   :  { %v1766_v14 = vadd.f32 %v1765_v44, %v1669_v3 }
 0x29c   :  { %v1798_v59 = vadd.f32 %v2839_v51, %v1766_v14 }
 0x29e   :  { %1814 = vst [vmem:[#allocation8 + $0x50] sm:$0xff] %v1798_v59 }
 0x29f   :  { %v1672_v62 = vpop.f32.mrf.mxu2  ;;  %v1773_v5 = vpop.f32.mrf.mxu3 }
 0x2a0   :  { %v1673_v4 = vadd.f32 %v1672_v62, %v1536_v36 }
 0x2a2   :  { %v1770_v16 = vadd.f32 %v1769_v33, %v1673_v4 }
 0x2a4   :  { %v1799_v60 = vadd.f32 %v2839_v51, %v1770_v16 }
 0x2a6   :  { %1815 = vst [vmem:[#allocation8 + $0x58] sm:$0xff] %v1799_v60 }
 0x2a7   :  { %v1676_v54 = vpop.f32.mrf.mxu2  ;;  %v1777_v63 = vpop.f32.mrf.mxu3 }
 0x2a8   :  { %v1677_v2 = vadd.f32 %v1676_v54, %v1542_v13 }
 0x2aa   :  { %v1774_v29 = vadd.f32 %v1773_v5, %v1677_v2 }
 0x2ac   :  { %v1800_v10 = vadd.f32 %v2839_v51, %v1774_v29 }
 0x2ae   :  { %1816 = vst [vmem:[#allocation8 + $0x60] sm:$0xff] %v1800_v10 }
 0x2af   :  { %v1680_v18 = vpop.f32.mrf.mxu2  ;;  %v1781_v24 = vpop.f32.mrf.mxu3 }
 0x2b0   :  { %v1681_v28 = vadd.f32 %v1680_v18, %v1548_v20 }
 0x2b2   :  { %v1778_v9 = vadd.f32 %v1777_v63, %v1681_v28 }
 0x2b4   :  { %v1801_v32 = vadd.f32 %v2839_v51, %v1778_v9 }
 0x2b6   :  { %1817 = vst [vmem:[#allocation8 + $0x68] sm:$0xff] %v1801_v32 }
 0x2b7   :  { %v1684_v6 = vpop.f32.mrf.mxu2  ;;  %v1785_v0 = vpop.f32.mrf.mxu3 }
 0x2b8   :  { %v1685_v41 = vadd.f32 %v1684_v6, %v1554_v27 }
 0x2ba   :  { %v1782_v50 = vadd.f32 %v1781_v24, %v1685_v41 }
 0x2bc   :  { %v1802_v56 = vadd.f32 %v2839_v51, %v1782_v50 }
 0x2be   :  { %1818 = vst [vmem:[#allocation8 + $0x70] sm:$0xff] %v1802_v56 }
 0x2bf   :  { %v1688_v42 = vpop.f32.mrf.mxu2 }
 0x2c0   :  { %v1689_v55 = vadd.f32 %v1688_v42, %v1560_v25 }
 0x2c2   :  { %v1786_v19 = vadd.f32 %v1785_v0, %v1689_v55 }
 0x2c4   :  { %v1803_v22 = vadd.f32 %v2839_v51, %v1786_v19 }
 0x2c6   :  { %1819 = vst [vmem:[#allocation8 + $0x78] sm:$0xff] %v1803_v22 }
 0x2c7   :  { %1832 = dma.vmem_to_hbm [thread:$0]  %s1825_s10, 2048, %s1827_s13, [#allocation4], %s1951_s26, %s1951_s26, %s1952_s27  }
 0x2c8   :  { %1948 = dma.done.wait [#allocation4], 2048  }
 0x2c9   :  { %1949 = vsyncadd [#allocation4], 4294965248 }
 0x2ca   :  { %1837 = vsyncpa [#allocation3], 1 }
 0x2cb   :  { %1838 = vsyncpa [#allocation6], 1 }
 0x2cc   :  { %1839 = vsyncpa [#allocation4], 1 }

</bundles_post_ra>
